<compile_context>
chip_gen: v7x
topology: tpu7x:2x2x1
jax: 0.10.0
libtpu: 0.0.40
codegen_flags: <defaults>
</compile_context>

<pallas_src>
import math

import jax
import jax.numpy as jnp
from jax.experimental import pallas as pl
from jax.experimental.pallas import tpu as pltpu

_BN_EPS = 1e-5
_LEAKY_SLOPE = 0.01  # nn.LeakyReLU() default

# Fixed argument order of parameters into the fused kernel.
_PARAM_ORDER = (
    "cmb_w0", "cmb_b0", "cmb_w1", "cmb_b1",
    "cat_w2", "cat_b2", "heads_t",
    "enc_w2", "enc_b2", "enc_w3", "enc_b3",
    "dec_w0", "dec_b0", "dec_w1", "dec_b1", "dec_w2", "dec_b2", "dec_w3", "dec_b3",
)


def _round_up(a, m):
    return -(-a // m) * m


# ----------------------------------------------------------------------------
# Fused Pallas kernel: x -> (y, z); all intermediates stay on-chip.
# ----------------------------------------------------------------------------
def _ae2_fused_kernel(x_ref,
                      cmb_w0, cmb_b0, cmb_w1, cmb_b1,
                      cat_w2, cat_b2, heads_t,
                      enc_w2, enc_b2, enc_w3, enc_b3,
                      dec_w0, dec_b0, dec_w1, dec_b1, dec_w2, dec_b2, dec_w3, dec_b3,
                      y_ref, z_ref):
    nh = enc_w2.shape[0]          # hidden width (static)
    nz = heads_t.shape[0]         # latent width (static)
    bm = x_ref.shape[0]           # batch tile (static)

    def mm(a, w_ref):
        # Cast activation to the weight's dtype (bf16 for the big layers) and
        # accumulate in f32 on the MXU.
        return jnp.dot(a.astype(w_ref.dtype), w_ref[...],
                       preferred_element_type=jnp.float32)

    def leaky(h):
        return jnp.maximum(h, _LEAKY_SLOPE * h)

    x = x_ref[...]

    # ---- shared packed layers (categorize branch | encoder branch) ---------
    # Layer 0: both branches consume x -> one 2*NH-wide matmul (fills the
    # 256-wide MXU on v6e/v7x, one RHS push, one bf16 cast of x).
    act = leaky(mm(x, cmb_w0) + cmb_b0[...])          # (bm, 2*nh)
    # Layer 1: block-diagonal packed (cat_w1 | enc_w1), mathematically exact.
    act = leaky(mm(act, cmb_w1) + cmb_b1[...])        # (bm, 2*nh)
    h_cat = act[:, :nh]
    a_enc = act[:, nh:]

    # ---- categorize head: softmax(logits) @ clusterheads -> loc ------------
    logits = mm(h_cat, cat_w2) + cat_b2[...]          # (bm, nclusters)
    m = jnp.max(logits, axis=-1, keepdims=True)
    e = jnp.exp(logits - m)
    p = e / jnp.sum(e, axis=-1, keepdims=True)        # exact; exp(log_softmax)==softmax

    # loc on the VPU: a (bm,20)@(20,2) MXU pass is almost pure push/drain
    # overhead.  heads_t is stored transposed as (nz, nclusters).
    ht = heads_t[...]
    cols = jax.lax.broadcasted_iota(jnp.int32, (bm, nz), 1)
    loc = jnp.zeros((bm, nz), jnp.float32)
    for j in range(nz):
        lj = jnp.sum(p * ht[j:j + 1, :], axis=-1, keepdims=True)   # (bm, 1)
        loc = jnp.where(cols == j, lj, loc)

    # ---- encoder tail: z = tanh(encoder(x)) + loc ---------------------------
    a = leaky(mm(a_enc, enc_w2) + enc_b2[...])
    z = jnp.tanh(mm(a, enc_w3) + enc_b3[...]) + loc
    z_ref[...] = z.astype(z_ref.dtype)

    # ---- decoder: y = decoder(z) --------------------------------------------
    # First (nz -> nh) layer via broadcast FMAs: a K=2 MXU pass is wasted push.
    dw0 = dec_w0[...]                                  # (nz, nh) f32
    d = dec_b0[...]
    for j in range(nz):
        d = d + z[:, j:j + 1] * dw0[j:j + 1, :]
    d = leaky(d)
    d = leaky(mm(d, dec_w1) + dec_b1[...])
    d = leaky(mm(d, dec_w2) + dec_b2[...])
    y_ref[...] = (mm(d, dec_w3) + dec_b3[...]).astype(y_ref.dtype)


# ----------------------------------------------------------------------------
# pallas_call wrapper
# ----------------------------------------------------------------------------
def ae2_forward(x, params, *, batch_tile=1024):
    B, NIN = x.shape
    NH = params["enc_w2"].shape[0]
    NZ = params["enc_w3"].shape[1]
    NC = params["cat_w2"].shape[1]

    # Batch tiling: pad B up to a multiple of the (8-aligned) tile so ragged
    # batches never become one giant block; grid >= 2 whenever B > tile.
    bt = max(8, (int(batch_tile) // 8) * 8)
    bm = _round_up(B, 8) if B <= bt else bt
    Bp = _round_up(B, bm)
    grid = (Bp // bm,)

    xp = x if Bp == B else jnp.pad(x, ((0, Bp - B), (0, 0)))

    def batch_spec(n):
        return pl.BlockSpec((bm, n), lambda i: (i, 0))

    def resident_spec(shape):
        # Constant index_map: parameter block stays VMEM-resident across the
        # (parallel) batch grid steps -- loaded once, reused by every tile.
        return pl.BlockSpec(shape, lambda i: (0, 0))

    in_specs = ([batch_spec(NIN)]
                + [resident_spec(tuple(params[k].shape)) for k in _PARAM_ORDER])
    out_specs = (batch_spec(NIN), batch_spec(NZ))
    out_shape = (jax.ShapeDtypeStruct((Bp, NIN), jnp.float32),
                 jax.ShapeDtypeStruct((Bp, NZ), jnp.float32))

    weight_bytes = sum(int(params[k].size) * params[k].dtype.itemsize
                       for k in _PARAM_ORDER)
    macs = sum(int(params[k].shape[0]) * int(params[k].shape[1])
               for k in _PARAM_ORDER if "_w" in k or k == "heads_t")
    cost = pl.CostEstimate(
        flops=2 * Bp * macs,
        transcendentals=Bp * (NC + NZ + 1),
        bytes_accessed=Bp * (2 * NIN + NZ) * 4 + weight_bytes)

    # Explicit VMEM budget: resident weights (double-buffered by default) +
    # double-buffered x/y tiles + generous allowance for materialized temps.
    vmem = (2 * weight_bytes
            + 4 * bm * NIN * 4
            + 16 * bm * max(2 * NH, NIN) * 4
            + (8 << 20))
    vmem = int(min(max(vmem, 32 << 20), 100 << 20))

    y, z = pl.pallas_call(
        _ae2_fused_kernel,
        grid=grid,
        in_specs=in_specs,
        out_specs=out_specs,
        out_shape=out_shape,
        compiler_params=pltpu.CompilerParams(
            dimension_semantics=("parallel",),
            vmem_limit_bytes=vmem),
        cost_estimate=cost,
    )(xp, *[params[k] for k in _PARAM_ORDER])

    if Bp != B:
        y = y[:B]
        z = z[:B]
    return y, z


# ----------------------------------------------------------------------------
# Parameter construction (deterministic, torch-Linear-style init) + packing
# ----------------------------------------------------------------------------
def _maybe_bf16(w):
    # Large hidden-layer weights -> bf16 (native MXU path, half the DMA bytes);
    # narrow (nz / nclusters sized) weights stay f32.
    return w.astype(jnp.bfloat16) if min(w.shape) >= 128 else w


def _linear_raw(key, fan_in, fan_out, bn):
    kw, kb = jax.random.split(key)
    bound = 1.0 / math.sqrt(fan_in)
    w = jax.random.uniform(kw, (fan_in, fan_out), jnp.float32, -bound, bound)
    b = jax.random.uniform(kb, (fan_out,), jnp.float32, -bound, bound)
    if bn:  # fold eval-mode BatchNorm1d (default running stats) -> exact scale
        s = 1.0 / math.sqrt(1.0 + _BN_EPS)
        w = w * s
        b = b * s
    return w, b.reshape(1, fan_out)  # bias as (1,N) for broadcast


def init_params(key, nin, nh, nz, nclusters):
    keys = jax.random.split(key, 16)
    # encoder: fc(nin,nh,bn) fc(nh,nh,bn) fc(nh,nh,bn) Linear(nh,nz)+Tanh
    enc_w0, enc_b0 = _linear_raw(keys[0], nin, nh, True)
    enc_w1, enc_b1 = _linear_raw(keys[1], nh, nh, True)
    enc_w2, enc_b2 = _linear_raw(keys[2], nh, nh, True)
    enc_w3, enc_b3 = _linear_raw(keys[3], nh, nz, False)
    # decoder: fc(nz,nh,no-bn) fc(nh,nh,bn) fc(nh,nh,bn) Linear(nh,nin)
    dec_w0, dec_b0 = _linear_raw(keys[4], nz, nh, False)
    dec_w1, dec_b1 = _linear_raw(keys[5], nh, nh, True)
    dec_w2, dec_b2 = _linear_raw(keys[6], nh, nh, True)
    dec_w3, dec_b3 = _linear_raw(keys[7], nh, nin, False)
    # categorize: fc(nin,nh,bn) fc(nh,nh,bn) Linear(nh,nclusters)+LogSoftmax
    cat_w0, cat_b0 = _linear_raw(keys[8], nin, nh, True)
    cat_w1, cat_b1 = _linear_raw(keys[9], nh, nh, True)
    cat_w2, cat_b2 = _linear_raw(keys[10], nh, nclusters, False)

    # MXU packing: layer-0 concat (both branches consume x) ...
    cmb_w0 = jnp.concatenate([cat_w0, enc_w0], axis=1)        # (nin, 2*nh)
    cmb_b0 = jnp.concatenate([cat_b0, enc_b0], axis=1)
    # ... and block-diagonal pack of the parallel layer-1 pair (exact).
    cmb_w1 = jnp.zeros((2 * nh, 2 * nh), jnp.float32)
    cmb_w1 = cmb_w1.at[:nh, :nh].set(cat_w1)
    cmb_w1 = cmb_w1.at[nh:, nh:].set(enc_w1)
    cmb_b1 = jnp.concatenate([cat_b1, enc_b1], axis=1)

    # clusterheads (nclusters, nz) with the hard-coded columns 0 and 1;
    # stored transposed (nz, nclusters) for the in-kernel VPU loc compute.
    ang = (2.0 * math.pi / nclusters) * jnp.arange(nclusters, dtype=jnp.float32)
    heads = jnp.zeros((nclusters, nz), jnp.float32)
    heads = heads.at[:, 0].set(10.0 * jnp.sin(ang))
    heads = heads.at[:, 1].set(10.0 * jnp.cos(ang))

    return {
        "cmb_w0": _maybe_bf16(cmb_w0), "cmb_b0": cmb_b0,
        "cmb_w1": _maybe_bf16(cmb_w1), "cmb_b1": cmb_b1,
        "cat_w2": _maybe_bf16(cat_w2), "cat_b2": cat_b2,
        "heads_t": heads.T,
        "enc_w2": _maybe_bf16(enc_w2), "enc_b2": enc_b2,
        "enc_w3": _maybe_bf16(enc_w3), "enc_b3": enc_b3,
        "dec_w0": dec_w0, "dec_b0": dec_b0,   # f32: used as VPU broadcast FMAs
        "dec_w1": _maybe_bf16(dec_w1), "dec_b1": dec_b1,
        "dec_w2": _maybe_bf16(dec_w2), "dec_b2": dec_b2,
        "dec_w3": _maybe_bf16(dec_w3), "dec_b3": dec_b3,
    }


# ----------------------------------------------------------------------------
# Pure-jnp reference mirroring the kernel math (same dtypes) for validation.
# ----------------------------------------------------------------------------
def ae2_reference(x, params):
    def mm(a, w):
        return jnp.dot(a.astype(w.dtype), w, preferred_element_type=jnp.float32)

    def leaky(h):
        return jnp.maximum(h, _LEAKY_SLOPE * h)

    nh = params["enc_w2"].shape[0]
    act = leaky(mm(x, params["cmb_w0"]) + params["cmb_b0"])
    act = leaky(mm(act, params["cmb_w1"]) + params["cmb_b1"])
    h_cat, a_enc = act[:, :nh], act[:, nh:]
    logits = mm(h_cat, params["cat_w2"]) + params["cat_b2"]
    p = jax.nn.softmax(logits, axis=-1)
    loc = jnp.dot(p, params["heads_t"].T)
    a = leaky(mm(a_enc, params["enc_w2"]) + params["enc_b2"])
    z = jnp.tanh(mm(a, params["enc_w3"]) + params["enc_b3"]) + loc
    d = leaky(jnp.dot(z, params["dec_w0"]) + params["dec_b0"])
    d = leaky(mm(d, params["dec_w1"]) + params["dec_b1"])
    d = leaky(mm(d, params["dec_w2"]) + params["dec_b2"])
    y = mm(d, params["dec_w3"]) + params["dec_b3"]
    return y, z


if __name__ == "__main__":
    # Small shapes consistent with the module (nin, nh, nz, nclusters).
    B, NIN, NH, NZ, NC = 40, 256, 128, 2, 20
    key = jax.random.PRNGKey(0)
    params = init_params(key, NIN, NH, NZ, NC)
    x = jax.random.normal(jax.random.fold_in(key, 999), (B, NIN), jnp.float32)

    # batch_tile=16 at this toy size just exercises the multi-step grid and the
    # ragged-batch padding path; for real workloads leave the 1024 default
    # (cap ~2048 on v7x so tiles + double-buffered I/O fit in 64 MiB VMEM).
    fwd = jax.jit(lambda xx: ae2_forward(xx, params, batch_tile=16))
    y, z = fwd(x)
    jax.block_until_ready((y, z))
    assert y.shape == (B, NIN) and z.shape == (B, NZ)
    assert bool(jnp.all(jnp.isfinite(y))) and bool(jnp.all(jnp.isfinite(z)))

    y_ref, z_ref = ae2_reference(x, params)
    assert float(jnp.max(jnp.abs(y - y_ref))) < 5e-2, "y mismatch vs jnp reference"
    assert float(jnp.max(jnp.abs(z - z_ref))) < 5e-2, "z mismatch vs jnp reference"
    print("KERNEL_OK")
</pallas_src>

<mosaic_0001>
module attributes {stable_mosaic.version = 11 : i64} {
  func.func @_ae2_fused_kernel(%arg0: i32, %arg1: memref<16x256xf32, #tpu.memory_space<vmem>>, %arg2: memref<256x256xbf16, #tpu.memory_space<vmem>>, %arg3: memref<1x256xf32, #tpu.memory_space<vmem>>, %arg4: memref<256x256xbf16, #tpu.memory_space<vmem>>, %arg5: memref<1x256xf32, #tpu.memory_space<vmem>>, %arg6: memref<128x20xf32, #tpu.memory_space<vmem>>, %arg7: memref<1x20xf32, #tpu.memory_space<vmem>>, %arg8: memref<2x20xf32, #tpu.memory_space<vmem>>, %arg9: memref<128x128xbf16, #tpu.memory_space<vmem>>, %arg10: memref<1x128xf32, #tpu.memory_space<vmem>>, %arg11: memref<128x2xf32, #tpu.memory_space<vmem>>, %arg12: memref<1x2xf32, #tpu.memory_space<vmem>>, %arg13: memref<2x128xf32, #tpu.memory_space<vmem>>, %arg14: memref<1x128xf32, #tpu.memory_space<vmem>>, %arg15: memref<128x128xbf16, #tpu.memory_space<vmem>>, %arg16: memref<1x128xf32, #tpu.memory_space<vmem>>, %arg17: memref<128x128xbf16, #tpu.memory_space<vmem>>, %arg18: memref<1x128xf32, #tpu.memory_space<vmem>>, %arg19: memref<128x256xbf16, #tpu.memory_space<vmem>>, %arg20: memref<1x256xf32, #tpu.memory_space<vmem>>, %arg21: memref<16x256xf32, #tpu.memory_space<vmem>>, %arg22: memref<16x2xf32, #tpu.memory_space<vmem>>) attributes {dimension_semantics = [#tpu.dimension_semantics<parallel>], iteration_bounds = array<i64: 3>, scalar_prefetch = 0 : i64, scratch_operands = 0 : i64, tpu.core_type = #tpu.core_type<tc>, window_params = [{transform_indices = @transform_0, window_bounds = array<i64: 16, 256>}, {pipeline_mode = #tpu.pipeline_mode<synchronous>, transform_indices = @transform_1, window_bounds = array<i64: 256, 256>}, {pipeline_mode = #tpu.pipeline_mode<synchronous>, transform_indices = @transform_2, window_bounds = array<i64: 1, 256>}, {pipeline_mode = #tpu.pipeline_mode<synchronous>, transform_indices = @transform_3, window_bounds = array<i64: 256, 256>}, {pipeline_mode = #tpu.pipeline_mode<synchronous>, transform_indices = @transform_4, window_bounds = array<i64: 1, 256>}, {pipeline_mode = #tpu.pipeline_mode<synchronous>, transform_indices = @transform_5, window_bounds = array<i64: 128, 20>}, {pipeline_mode = #tpu.pipeline_mode<synchronous>, transform_indices = @transform_6, window_bounds = array<i64: 1, 20>}, {pipeline_mode = #tpu.pipeline_mode<synchronous>, transform_indices = @transform_7, window_bounds = array<i64: 2, 20>}, {pipeline_mode = #tpu.pipeline_mode<synchronous>, transform_indices = @transform_8, window_bounds = array<i64: 128, 128>}, {pipeline_mode = #tpu.pipeline_mode<synchronous>, transform_indices = @transform_9, window_bounds = array<i64: 1, 128>}, {pipeline_mode = #tpu.pipeline_mode<synchronous>, transform_indices = @transform_10, window_bounds = array<i64: 128, 2>}, {pipeline_mode = #tpu.pipeline_mode<synchronous>, transform_indices = @transform_11, window_bounds = array<i64: 1, 2>}, {pipeline_mode = #tpu.pipeline_mode<synchronous>, transform_indices = @transform_12, window_bounds = array<i64: 2, 128>}, {pipeline_mode = #tpu.pipeline_mode<synchronous>, transform_indices = @transform_13, window_bounds = array<i64: 1, 128>}, {pipeline_mode = #tpu.pipeline_mode<synchronous>, transform_indices = @transform_14, window_bounds = array<i64: 128, 128>}, {pipeline_mode = #tpu.pipeline_mode<synchronous>, transform_indices = @transform_15, window_bounds = array<i64: 1, 128>}, {pipeline_mode = #tpu.pipeline_mode<synchronous>, transform_indices = @transform_16, window_bounds = array<i64: 128, 128>}, {pipeline_mode = #tpu.pipeline_mode<synchronous>, transform_indices = @transform_17, window_bounds = array<i64: 1, 128>}, {pipeline_mode = #tpu.pipeline_mode<synchronous>, transform_indices = @transform_18, window_bounds = array<i64: 128, 256>}, {pipeline_mode = #tpu.pipeline_mode<synchronous>, transform_indices = @transform_19, window_bounds = array<i64: 1, 256>}, {transform_indices = @transform_20, window_bounds = array<i64: 16, 256>}, {transform_indices = @transform_21, window_bounds = array<i64: 16, 2>}]} {
    %c0 = arith.constant 0 : index
    %c0_0 = arith.constant 0 : index
    %0 = vector.load %arg1[%c0, %c0_0] : memref<16x256xf32, #tpu.memory_space<vmem>>, vector<16x256xf32>
    %1 = arith.truncf %0 : vector<16x256xf32> to vector<16x256xbf16>
    %c0_1 = arith.constant 0 : index
    %c0_2 = arith.constant 0 : index
    %2 = vector.load %arg2[%c0_1, %c0_2] : memref<256x256xbf16, #tpu.memory_space<vmem>>, vector<256x256xbf16>
    %cst = arith.constant dense<0.000000e+00> : vector<16x256xf32>
    %3 = tpu.matmul %1, %2, %cst {dimension_numbers = #tpu.dot_dimension_numbers<[1], [0], [0], [1], [0, 0, 1, 1], [], []>} : vector<16x256xbf16>, vector<256x256xbf16>, vector<16x256xf32> -> vector<16x256xf32>
    %c0_3 = arith.constant 0 : index
    %c0_4 = arith.constant 0 : index
    %4 = vector.load %arg3[%c0_3, %c0_4] : memref<1x256xf32, #tpu.memory_space<vmem>>, vector<1x256xf32>
    %5 = vector.broadcast %4 : vector<1x256xf32> to vector<16x256xf32>
    %6 = arith.addf %3, %5 : vector<16x256xf32>
    %cst_5 = arith.constant 0.00999999977 : f32
    %7 = vector.broadcast %cst_5 : f32 to vector<16x256xf32>
    %8 = arith.mulf %7, %6 : vector<16x256xf32>
    %9 = arith.maximumf %6, %8 : vector<16x256xf32>
    %10 = arith.truncf %9 : vector<16x256xf32> to vector<16x256xbf16>
    %c0_6 = arith.constant 0 : index
    %c0_7 = arith.constant 0 : index
    %11 = vector.load %arg4[%c0_6, %c0_7] : memref<256x256xbf16, #tpu.memory_space<vmem>>, vector<256x256xbf16>
    %cst_8 = arith.constant dense<0.000000e+00> : vector<16x256xf32>
    %12 = tpu.matmul %10, %11, %cst_8 {dimension_numbers = #tpu.dot_dimension_numbers<[1], [0], [0], [1], [0, 0, 1, 1], [], []>} : vector<16x256xbf16>, vector<256x256xbf16>, vector<16x256xf32> -> vector<16x256xf32>
    %c0_9 = arith.constant 0 : index
    %c0_10 = arith.constant 0 : index
    %13 = vector.load %arg5[%c0_9, %c0_10] : memref<1x256xf32, #tpu.memory_space<vmem>>, vector<1x256xf32>
    %14 = vector.broadcast %13 : vector<1x256xf32> to vector<16x256xf32>
    %15 = arith.addf %12, %14 : vector<16x256xf32>
    %cst_11 = arith.constant 0.00999999977 : f32
    %16 = vector.broadcast %cst_11 : f32 to vector<16x256xf32>
    %17 = arith.mulf %16, %15 : vector<16x256xf32>
    %18 = arith.maximumf %15, %17 : vector<16x256xf32>
    %19 = vector.extract_strided_slice %18 {offsets = [0, 0], sizes = [16, 128], strides = [1, 1]} : vector<16x256xf32> to vector<16x128xf32>
    %20 = vector.extract_strided_slice %18 {offsets = [0, 128], sizes = [16, 128], strides = [1, 1]} : vector<16x256xf32> to vector<16x128xf32>
    %c0_12 = arith.constant 0 : index
    %c0_13 = arith.constant 0 : index
    %21 = vector.load %arg6[%c0_12, %c0_13] : memref<128x20xf32, #tpu.memory_space<vmem>>, vector<128x20xf32>
    %cst_14 = arith.constant dense<0.000000e+00> : vector<16x20xf32>
    %22 = tpu.matmul %19, %21, %cst_14 {dimension_numbers = #tpu.dot_dimension_numbers<[1], [0], [0], [1], [0, 0, 1, 1], [], []>} : vector<16x128xf32>, vector<128x20xf32>, vector<16x20xf32> -> vector<16x20xf32>
    %c0_15 = arith.constant 0 : index
    %c0_16 = arith.constant 0 : index
    %23 = vector.load %arg7[%c0_15, %c0_16] : memref<1x20xf32, #tpu.memory_space<vmem>>, vector<1x20xf32>
    %24 = vector.broadcast %23 : vector<1x20xf32> to vector<16x20xf32>
    %25 = arith.addf %22, %24 : vector<16x20xf32>
    %cst_17 = arith.constant dense<0xFF800000> : vector<16xf32>
    %26 = vector.multi_reduction <maximumf>, %25, %cst_17 [1] : vector<16x20xf32> to vector<16xf32>
    %27 = vector.shape_cast %26 : vector<16xf32> to vector<16x1xf32>
    %28 = vector.broadcast %27 : vector<16x1xf32> to vector<16x20xf32>
    %29 = arith.subf %25, %28 : vector<16x20xf32>
    %30 = math.exp %29 : vector<16x20xf32>
    %cst_18 = arith.constant dense<0.000000e+00> : vector<16xf32>
    %31 = vector.multi_reduction <add>, %30, %cst_18 [1] : vector<16x20xf32> to vector<16xf32>
    %32 = vector.shape_cast %31 : vector<16xf32> to vector<16x1xf32>
    %33 = vector.broadcast %32 : vector<16x1xf32> to vector<16x20xf32>
    %34 = arith.divf %30, %33 : vector<16x20xf32>
    %c0_19 = arith.constant 0 : index
    %c0_20 = arith.constant 0 : index
    %35 = vector.load %arg8[%c0_19, %c0_20] : memref<2x20xf32, #tpu.memory_space<vmem>>, vector<2x20xf32>
    %36 = tpu.iota {dimensions = array<i32: 1>} : vector<16x2xi32>
    %cst_21 = arith.constant 0.000000e+00 : f32
    %37 = vector.broadcast %cst_21 : f32 to vector<16x2xf32>
    %38 = vector.extract_strided_slice %35 {offsets = [0, 0], sizes = [1, 20], strides = [1, 1]} : vector<2x20xf32> to vector<1x20xf32>
    %39 = vector.broadcast %38 : vector<1x20xf32> to vector<16x20xf32>
    %40 = arith.mulf %34, %39 : vector<16x20xf32>
    %cst_22 = arith.constant dense<0.000000e+00> : vector<16xf32>
    %41 = vector.multi_reduction <add>, %40, %cst_22 [1] : vector<16x20xf32> to vector<16xf32>
    %42 = vector.shape_cast %41 : vector<16xf32> to vector<16x1xf32>
    %c0_i32 = arith.constant 0 : i32
    %43 = vector.broadcast %c0_i32 : i32 to vector<16x2xi32>
    %44 = arith.cmpi eq, %36, %43 : vector<16x2xi32>
    %45 = vector.shape_cast %42 : vector<16x1xf32> to vector<16x1xf32>
    %46 = vector.broadcast %45 : vector<16x1xf32> to vector<16x2xf32>
    %47 = arith.select %44, %46, %37 : vector<16x2xi1>, vector<16x2xf32>
    %48 = vector.extract_strided_slice %35 {offsets = [1, 0], sizes = [1, 20], strides = [1, 1]} : vector<2x20xf32> to vector<1x20xf32>
    %49 = vector.broadcast %48 : vector<1x20xf32> to vector<16x20xf32>
    %50 = arith.mulf %34, %49 : vector<16x20xf32>
    %cst_23 = arith.constant dense<0.000000e+00> : vector<16xf32>
    %51 = vector.multi_reduction <add>, %50, %cst_23 [1] : vector<16x20xf32> to vector<16xf32>
    %52 = vector.shape_cast %51 : vector<16xf32> to vector<16x1xf32>
    %c1_i32 = arith.constant 1 : i32
    %53 = vector.broadcast %c1_i32 : i32 to vector<16x2xi32>
    %54 = arith.cmpi eq, %36, %53 : vector<16x2xi32>
    %55 = vector.shape_cast %52 : vector<16x1xf32> to vector<16x1xf32>
    %56 = vector.broadcast %55 : vector<16x1xf32> to vector<16x2xf32>
    %57 = arith.select %54, %56, %47 : vector<16x2xi1>, vector<16x2xf32>
    %58 = arith.truncf %20 : vector<16x128xf32> to vector<16x128xbf16>
    %c0_24 = arith.constant 0 : index
    %c0_25 = arith.constant 0 : index
    %59 = vector.load %arg9[%c0_24, %c0_25] : memref<128x128xbf16, #tpu.memory_space<vmem>>, vector<128x128xbf16>
    %cst_26 = arith.constant dense<0.000000e+00> : vector<16x128xf32>
    %60 = tpu.matmul %58, %59, %cst_26 {dimension_numbers = #tpu.dot_dimension_numbers<[1], [0], [0], [1], [0, 0, 1, 1], [], []>} : vector<16x128xbf16>, vector<128x128xbf16>, vector<16x128xf32> -> vector<16x128xf32>
    %c0_27 = arith.constant 0 : index
    %c0_28 = arith.constant 0 : index
    %61 = vector.load %arg10[%c0_27, %c0_28] : memref<1x128xf32, #tpu.memory_space<vmem>>, vector<1x128xf32>
    %62 = vector.broadcast %61 : vector<1x128xf32> to vector<16x128xf32>
    %63 = arith.addf %60, %62 : vector<16x128xf32>
    %cst_29 = arith.constant 0.00999999977 : f32
    %64 = vector.broadcast %cst_29 : f32 to vector<16x128xf32>
    %65 = arith.mulf %64, %63 : vector<16x128xf32>
    %66 = arith.maximumf %63, %65 : vector<16x128xf32>
    %c0_30 = arith.constant 0 : index
    %c0_31 = arith.constant 0 : index
    %67 = vector.load %arg11[%c0_30, %c0_31] : memref<128x2xf32, #tpu.memory_space<vmem>>, vector<128x2xf32>
    %cst_32 = arith.constant dense<0.000000e+00> : vector<16x2xf32>
    %68 = tpu.matmul %66, %67, %cst_32 {dimension_numbers = #tpu.dot_dimension_numbers<[1], [0], [0], [1], [0, 0, 1, 1], [], []>} : vector<16x128xf32>, vector<128x2xf32>, vector<16x2xf32> -> vector<16x2xf32>
    %c0_33 = arith.constant 0 : index
    %c0_34 = arith.constant 0 : index
    %69 = vector.load %arg12[%c0_33, %c0_34] : memref<1x2xf32, #tpu.memory_space<vmem>>, vector<1x2xf32>
    %70 = vector.broadcast %69 : vector<1x2xf32> to vector<16x2xf32>
    %71 = arith.addf %68, %70 : vector<16x2xf32>
    %72 = math.tanh %71 : vector<16x2xf32>
    %73 = arith.addf %72, %57 : vector<16x2xf32>
    %c0_35 = arith.constant 0 : index
    %c0_36 = arith.constant 0 : index
    %74 = vector.load %arg22[%c0_35, %c0_36] : memref<16x2xf32, #tpu.memory_space<vmem>>, vector<16x2xf32>
    tpu.vector_store %arg22[%c0_35, %c0_36], %73 {strides = array<i32>} : memref<16x2xf32, #tpu.memory_space<vmem>>, vector<16x2xf32>,
    %c0_37 = arith.constant 0 : index
    %c0_38 = arith.constant 0 : index
    %75 = vector.load %arg13[%c0_37, %c0_38] : memref<2x128xf32, #tpu.memory_space<vmem>>, vector<2x128xf32>
    %c0_39 = arith.constant 0 : index
    %c0_40 = arith.constant 0 : index
    %76 = vector.load %arg14[%c0_39, %c0_40] : memref<1x128xf32, #tpu.memory_space<vmem>>, vector<1x128xf32>
    %77 = vector.extract_strided_slice %73 {offsets = [0, 0], sizes = [16, 1], strides = [1, 1]} : vector<16x2xf32> to vector<16x1xf32>
    %78 = vector.extract_strided_slice %75 {offsets = [0, 0], sizes = [1, 128], strides = [1, 1]} : vector<2x128xf32> to vector<1x128xf32>
    %79 = vector.broadcast %77 : vector<16x1xf32> to vector<16x128xf32>
    %80 = vector.broadcast %78 : vector<1x128xf32> to vector<16x128xf32>
    %81 = arith.mulf %79, %80 : vector<16x128xf32>
    %82 = vector.broadcast %76 : vector<1x128xf32> to vector<16x128xf32>
    %83 = arith.addf %82, %81 : vector<16x128xf32>
    %84 = vector.extract_strided_slice %73 {offsets = [0, 1], sizes = [16, 1], strides = [1, 1]} : vector<16x2xf32> to vector<16x1xf32>
    %85 = vector.extract_strided_slice %75 {offsets = [1, 0], sizes = [1, 128], strides = [1, 1]} : vector<2x128xf32> to vector<1x128xf32>
    %86 = vector.broadcast %84 : vector<16x1xf32> to vector<16x128xf32>
    %87 = vector.broadcast %85 : vector<1x128xf32> to vector<16x128xf32>
    %88 = arith.mulf %86, %87 : vector<16x128xf32>
    %89 = arith.addf %83, %88 : vector<16x128xf32>
    %cst_41 = arith.constant 0.00999999977 : f32
    %90 = vector.broadcast %cst_41 : f32 to vector<16x128xf32>
    %91 = arith.mulf %90, %89 : vector<16x128xf32>
    %92 = arith.maximumf %89, %91 : vector<16x128xf32>
    %93 = arith.truncf %92 : vector<16x128xf32> to vector<16x128xbf16>
    %c0_42 = arith.constant 0 : index
    %c0_43 = arith.constant 0 : index
    %94 = vector.load %arg15[%c0_42, %c0_43] : memref<128x128xbf16, #tpu.memory_space<vmem>>, vector<128x128xbf16>
    %cst_44 = arith.constant dense<0.000000e+00> : vector<16x128xf32>
    %95 = tpu.matmul %93, %94, %cst_44 {dimension_numbers = #tpu.dot_dimension_numbers<[1], [0], [0], [1], [0, 0, 1, 1], [], []>} : vector<16x128xbf16>, vector<128x128xbf16>, vector<16x128xf32> -> vector<16x128xf32>
    %c0_45 = arith.constant 0 : index
    %c0_46 = arith.constant 0 : index
    %96 = vector.load %arg16[%c0_45, %c0_46] : memref<1x128xf32, #tpu.memory_space<vmem>>, vector<1x128xf32>
    %97 = vector.broadcast %96 : vector<1x128xf32> to vector<16x128xf32>
    %98 = arith.addf %95, %97 : vector<16x128xf32>
    %cst_47 = arith.constant 0.00999999977 : f32
    %99 = vector.broadcast %cst_47 : f32 to vector<16x128xf32>
    %100 = arith.mulf %99, %98 : vector<16x128xf32>
    %101 = arith.maximumf %98, %100 : vector<16x128xf32>
    %102 = arith.truncf %101 : vector<16x128xf32> to vector<16x128xbf16>
    %c0_48 = arith.constant 0 : index
    %c0_49 = arith.constant 0 : index
    %103 = vector.load %arg17[%c0_48, %c0_49] : memref<128x128xbf16, #tpu.memory_space<vmem>>, vector<128x128xbf16>
    %cst_50 = arith.constant dense<0.000000e+00> : vector<16x128xf32>
    %104 = tpu.matmul %102, %103, %cst_50 {dimension_numbers = #tpu.dot_dimension_numbers<[1], [0], [0], [1], [0, 0, 1, 1], [], []>} : vector<16x128xbf16>, vector<128x128xbf16>, vector<16x128xf32> -> vector<16x128xf32>
    %c0_51 = arith.constant 0 : index
    %c0_52 = arith.constant 0 : index
    %105 = vector.load %arg18[%c0_51, %c0_52] : memref<1x128xf32, #tpu.memory_space<vmem>>, vector<1x128xf32>
    %106 = vector.broadcast %105 : vector<1x128xf32> to vector<16x128xf32>
    %107 = arith.addf %104, %106 : vector<16x128xf32>
    %cst_53 = arith.constant 0.00999999977 : f32
    %108 = vector.broadcast %cst_53 : f32 to vector<16x128xf32>
    %109 = arith.mulf %108, %107 : vector<16x128xf32>
    %110 = arith.maximumf %107, %109 : vector<16x128xf32>
    %111 = arith.truncf %110 : vector<16x128xf32> to vector<16x128xbf16>
    %c0_54 = arith.constant 0 : index
    %c0_55 = arith.constant 0 : index
    %112 = vector.load %arg19[%c0_54, %c0_55] : memref<128x256xbf16, #tpu.memory_space<vmem>>, vector<128x256xbf16>
    %cst_56 = arith.constant dense<0.000000e+00> : vector<16x256xf32>
    %113 = tpu.matmul %111, %112, %cst_56 {dimension_numbers = #tpu.dot_dimension_numbers<[1], [0], [0], [1], [0, 0, 1, 1], [], []>} : vector<16x128xbf16>, vector<128x256xbf16>, vector<16x256xf32> -> vector<16x256xf32>
    %c0_57 = arith.constant 0 : index
    %c0_58 = arith.constant 0 : index
    %114 = vector.load %arg20[%c0_57, %c0_58] : memref<1x256xf32, #tpu.memory_space<vmem>>, vector<1x256xf32>
    %115 = vector.broadcast %114 : vector<1x256xf32> to vector<16x256xf32>
    %116 = arith.addf %113, %115 : vector<16x256xf32>
    %c0_59 = arith.constant 0 : index
    %c0_60 = arith.constant 0 : index
    %117 = vector.load %arg21[%c0_59, %c0_60] : memref<16x256xf32, #tpu.memory_space<vmem>>, vector<16x256xf32>
    tpu.vector_store %arg21[%c0_59, %c0_60], %116 {strides = array<i32>} : memref<16x256xf32, #tpu.memory_space<vmem>>, vector<16x256xf32>,
    return
  }
  func.func @transform_0(%arg0: i32) -> (i32, i32) {
    %c0_i32 = arith.constant 0 : i32
    %c0_i32_0 = arith.constant 0 : i32
    return %arg0, %c0_i32 : i32, i32
  }
  func.func @transform_1(%arg0: i32) -> (i32, i32) {
    %c0_i32 = arith.constant 0 : i32
    %c0_i32_0 = arith.constant 0 : i32
    %c0_i32_1 = arith.constant 0 : i32
    return %c0_i32, %c0_i32_0 : i32, i32
  }
  func.func @transform_2(%arg0: i32) -> (i32, i32) {
    %c0_i32 = arith.constant 0 : i32
    %c0_i32_0 = arith.constant 0 : i32
    %c0_i32_1 = arith.constant 0 : i32
    return %c0_i32, %c0_i32_0 : i32, i32
  }
  func.func @transform_3(%arg0: i32) -> (i32, i32) {
    %c0_i32 = arith.constant 0 : i32
    %c0_i32_0 = arith.constant 0 : i32
    %c0_i32_1 = arith.constant 0 : i32
    return %c0_i32, %c0_i32_0 : i32, i32
  }
  func.func @transform_4(%arg0: i32) -> (i32, i32) {
    %c0_i32 = arith.constant 0 : i32
    %c0_i32_0 = arith.constant 0 : i32
    %c0_i32_1 = arith.constant 0 : i32
    return %c0_i32, %c0_i32_0 : i32, i32
  }
  func.func @transform_5(%arg0: i32) -> (i32, i32) {
    %c0_i32 = arith.constant 0 : i32
    %c0_i32_0 = arith.constant 0 : i32
    %c0_i32_1 = arith.constant 0 : i32
    return %c0_i32, %c0_i32_0 : i32, i32
  }
  func.func @transform_6(%arg0: i32) -> (i32, i32) {
    %c0_i32 = arith.constant 0 : i32
    %c0_i32_0 = arith.constant 0 : i32
    %c0_i32_1 = arith.constant 0 : i32
    return %c0_i32, %c0_i32_0 : i32, i32
  }
  func.func @transform_7(%arg0: i32) -> (i32, i32) {
    %c0_i32 = arith.constant 0 : i32
    %c0_i32_0 = arith.constant 0 : i32
    %c0_i32_1 = arith.constant 0 : i32
    return %c0_i32, %c0_i32_0 : i32, i32
  }
  func.func @transform_8(%arg0: i32) -> (i32, i32) {
    %c0_i32 = arith.constant 0 : i32
    %c0_i32_0 = arith.constant 0 : i32
    %c0_i32_1 = arith.constant 0 : i32
    return %c0_i32, %c0_i32_0 : i32, i32
  }
  func.func @transform_9(%arg0: i32) -> (i32, i32) {
    %c0_i32 = arith.constant 0 : i32
    %c0_i32_0 = arith.constant 0 : i32
    %c0_i32_1 = arith.constant 0 : i32
    return %c0_i32, %c0_i32_0 : i32, i32
  }
  func.func @transform_10(%arg0: i32) -> (i32, i32) {
    %c0_i32 = arith.constant 0 : i32
    %c0_i32_0 = arith.constant 0 : i32
    %c0_i32_1 = arith.constant 0 : i32
    return %c0_i32, %c0_i32_0 : i32, i32
  }
  func.func @transform_11(%arg0: i32) -> (i32, i32) {
    %c0_i32 = arith.constant 0 : i32
    %c0_i32_0 = arith.constant 0 : i32
    %c0_i32_1 = arith.constant 0 : i32
    return %c0_i32, %c0_i32_0 : i32, i32
  }
  func.func @transform_12(%arg0: i32) -> (i32, i32) {
    %c0_i32 = arith.constant 0 : i32
    %c0_i32_0 = arith.constant 0 : i32
    %c0_i32_1 = arith.constant 0 : i32
    return %c0_i32, %c0_i32_0 : i32, i32
  }
  func.func @transform_13(%arg0: i32) -> (i32, i32) {
    %c0_i32 = arith.constant 0 : i32
    %c0_i32_0 = arith.constant 0 : i32
    %c0_i32_1 = arith.constant 0 : i32
    return %c0_i32, %c0_i32_0 : i32, i32
  }
  func.func @transform_14(%arg0: i32) -> (i32, i32) {
    %c0_i32 = arith.constant 0 : i32
    %c0_i32_0 = arith.constant 0 : i32
    %c0_i32_1 = arith.constant 0 : i32
    return %c0_i32, %c0_i32_0 : i32, i32
  }
  func.func @transform_15(%arg0: i32) -> (i32, i32) {
    %c0_i32 = arith.constant 0 : i32
    %c0_i32_0 = arith.constant 0 : i32
    %c0_i32_1 = arith.constant 0 : i32
    return %c0_i32, %c0_i32_0 : i32, i32
  }
  func.func @transform_16(%arg0: i32) -> (i32, i32) {
    %c0_i32 = arith.constant 0 : i32
    %c0_i32_0 = arith.constant 0 : i32
    %c0_i32_1 = arith.constant 0 : i32
    return %c0_i32, %c0_i32_0 : i32, i32
  }
  func.func @transform_17(%arg0: i32) -> (i32, i32) {
    %c0_i32 = arith.constant 0 : i32
    %c0_i32_0 = arith.constant 0 : i32
    %c0_i32_1 = arith.constant 0 : i32
    return %c0_i32, %c0_i32_0 : i32, i32
  }
  func.func @transform_18(%arg0: i32) -> (i32, i32) {
    %c0_i32 = arith.constant 0 : i32
    %c0_i32_0 = arith.constant 0 : i32
    %c0_i32_1 = arith.constant 0 : i32
    return %c0_i32, %c0_i32_0 : i32, i32
  }
  func.func @transform_19(%arg0: i32) -> (i32, i32) {
    %c0_i32 = arith.constant 0 : i32
    %c0_i32_0 = arith.constant 0 : i32
    %c0_i32_1 = arith.constant 0 : i32
    return %c0_i32, %c0_i32_0 : i32, i32
  }
  func.func @transform_20(%arg0: i32) -> (i32, i32) {
    %c0_i32 = arith.constant 0 : i32
    %c0_i32_0 = arith.constant 0 : i32
    return %arg0, %c0_i32 : i32, i32
  }
  func.func @transform_21(%arg0: i32) -> (i32, i32) {
    %c0_i32 = arith.constant 0 : i32
    %c0_i32_0 = arith.constant 0 : i32
    return %arg0, %c0_i32 : i32, i32
  }
}

</mosaic_0001>

<bundles_post_ra>
// kernel: _lambda_.1
= control target key start
LH: loop header
LB: loop body
LE: loop exit
PB: predicated region body
PF: predicated region fallthrough
CT: control target
= control target key end

     0   :  { %s3314_s0 = inlined_call_operand.vmem [shape: f32[48,256], index: 0, kind: input, shape index: {}]   ;;  %s3315_s1 = inlined_call_operand.vmem [shape: bf16[256,256], index: 1, kind: input, shape index: {}]   ;;  %s3316_s2 = inlined_call_operand.vmem [shape: f32[1,256], index: 2, kind: input, shape index: {}]   ;;  %s3317_s3 = inlined_call_operand.vmem [shape: bf16[256,256], index: 3, kind: input, shape index: {}]   ;;  %s3318_s4 = inlined_call_operand.vmem [shape: f32[1,256], index: 4, kind: input, shape index: {}]   ;;  %s3319_s5 = inlined_call_operand.vmem [shape: f32[128,20], index: 5, kind: input, shape index: {}]   ;;  %s3320_s6 = inlined_call_operand.vmem [shape: f32[1,20], index: 6, kind: input, shape index: {}]   ;;  %s3321_s7 = inlined_call_operand.vmem [shape: f32[2,20], index: 7, kind: input, shape index: {}]   ;;  %s3322_s8 = inlined_call_operand.vmem [shape: bf16[128,128], index: 8, kind: input, shape index: {}]   ;;  %s3323_s9 = inlined_call_operand.vmem [shape: f32[1,128], index: 9, kind: input, shape index: {}]   ;;  %s3324_s10 = inlined_call_operand.vmem [shape: f32[128,2], index: 10, kind: input, shape index: {}]   ;;  %s3325_s11 = inlined_call_operand.vmem [shape: f32[1,2], index: 11, kind: input, shape index: {}]   ;;  %s3326_s12 = inlined_call_operand.vmem [shape: f32[2,128], index: 12, kind: input, shape index: {}]   ;;  %s3327_s13 = inlined_call_operand.vmem [shape: f32[1,128], index: 13, kind: input, shape index: {}]   ;;  %s3328_s14 = inlined_call_operand.vmem [shape: bf16[128,128], index: 14, kind: input, shape index: {}]   ;;  %s3329_s15 = inlined_call_operand.vmem [shape: f32[1,128], index: 15, kind: input, shape index: {}]   ;;  %s3330_s16 = inlined_call_operand.vmem [shape: bf16[128,128], index: 16, kind: input, shape index: {}]   ;;  %s3331_s17 = inlined_call_operand.vmem [shape: f32[1,128], index: 17, kind: input, shape index: {}]   ;;  %s3332_s18 = inlined_call_operand.vmem [shape: bf16[128,256], index: 18, kind: input, shape index: {}]   ;;  %s3333_s19 = inlined_call_operand.vmem [shape: f32[1,256], index: 19, kind: input, shape index: {}]   ;;  %s3334_s20 = inlined_call_operand.vmem [shape: f32[48,256], index: 20, kind: output, shape index: {0}]   ;;  %s3335_s21 = inlined_call_operand.vmem [shape: f32[48,2], index: 21, kind: output, shape index: {1}]  }
   0x1   :  { %3340 = sst [smem:[#allocation2_spill]] %s3314_s0 }
   0x2   :  { %3341 = sst [smem:[#allocation3_spill]] %s3315_s1 }
   0x3   :  { %3342 = sst [smem:[#allocation4_spill]] %s3316_s2  ;;  %s2780_s2 = smov 0  }
   0x4   :  { %3343 = sst [smem:[#allocation5_spill]] %s3317_s3 }
   0x5   :  { %3344 = sst [smem:[#allocation6_spill]] %s3318_s4 }
   0x6   :  { %3345 = sst [smem:[#allocation7_spill]] %s3319_s5 }
   0x7 LB: > { %s2102_s25 = sadd.s32 4294967295, %s2664_s2   ;;  %p2106_p0 = scmp.ge.s32.totalorder %s2664_s2, 1  ;;  %s2664_s2 = sphi %s2780_s2, %s32_s2  }
   0x8   : > { %p592_p1 = scmp.lt.s32.totalorder %s2664_s2, 4 }
   0xa   : > { %p593_p2 = pnand %p2106_p0, %p592_p1 }
   0xb   : > { %s3346_s3 = sld [smem:[#allocation3_spill]] (!%p593_p2)  ;;  %s2107_s1 = sshll.u32 (!%p593_p2), %s2102_s25, 1  ;;  %vm2667_vm0 = vmmov (!%p593_p2), 0   ;;  %vm1296_vm1 = vcmask (!%p593_p2), 162816   ;;  %vm1571_vm4 = vcmask (!%p593_p2), 15360  }
   0xc   : > { %596 = sbr.rel (%p593_p2) target bundleno = 2020 (0x7e4), region = 100  ;;  %p660_p3 = scmp.lt.s32.totalorder (!%p593_p2), %s2107_s1, 5 }
   0xd   : > { %s3347_s28 = sld [smem:[#allocation2_spill]] (!%p593_p2)  ;;  %s3348_s0 = sld [smem:[#allocation5_spill]] (!%p593_p2) }
   0xe   : > { %s3349_s24 = sld [smem:[#allocation7_spill]] (!%p593_p2)  ;;  %s3351_s25 = sld [smem:[#allocation6_spill]] (!%p593_p2) }
  0x11   : > { %v2502_v0 = vld [vmem:[%s3346_s3 + $0x4] ss:$8 sps:$4 sm:$0xff] (!%p593_p2)   ;;  %v2504_v1 = vld [vmem:[%s3346_s3] ss:$8 sps:$4 sm:$0xff] (!%p593_p2)   ;;  %v2505_v2 = vld [vmem:[%s3346_s3 + $0x14] ss:$8 sps:$4 sm:$0xff] (!%p593_p2)  }
  0x12   : > { %890 = vmatprep.subr.bf16.mxu0 (!%p593_p2), %v2502_v0  ;;  %v2507_v3 = vld [vmem:[%s3346_s3 + $0x10] ss:$8 sps:$4 sm:$0xff] (!%p593_p2)   ;;  %v2508_v4 = vld [vmem:[%s3346_s3 + $0x24] ss:$8 sps:$4 sm:$0xff] (!%p593_p2)   ;;  %v2510_v5 = vld [vmem:[%s3346_s3 + $0x20] ss:$8 sps:$4 sm:$0xff] (!%p593_p2)  }
  0x13   : > { %891 = vmatpush1.bf16.msra.mxu0 %v2504_v1  ;;  %v2511_v6 = vld [vmem:[%s3346_s3 + $0x34] ss:$8 sps:$4 sm:$0xff]   ;;  %v2513_v7 = vld [vmem:[%s3346_s3 + $0x30] ss:$8 sps:$4 sm:$0xff]   ;;  %s3354_s1 = smov (!%p660_p3, %s2107_s1), 5 }
  0x14   : > { %892 = vmatprep.subr.bf16.mxu0 %v2505_v2  ;;  %v2514_v8 = vld [vmem:[%s3346_s3 + $0x44] ss:$8 sps:$4 sm:$0xff]   ;;  %v2516_v9 = vld [vmem:[%s3346_s3 + $0x40] ss:$8 sps:$4 sm:$0xff]   ;;  %s3339_s22 = sshll.u32 %s3354_s1, 4  ;;  %s2114_s4 = sshll.u32 %s3354_s1, 3 }
  0x15   : > { %v2517_v10 = vld [vmem:[%s3346_s3 + $0x54] ss:$8 sps:$4 sm:$0xff]   ;;  %s2829_s29 = scalar_lea.vmem %s3347_s28, %s3339_s22  ;;  %v2519_v11 = vld [vmem:[%s3346_s3 + $0x50] ss:$8 sps:$4 sm:$0xff]   ;;  %v2520_v12 = vld [vmem:[%s3346_s3 + $0x64] ss:$8 sps:$4 sm:$0xff]   ;;  %s677_s23 = scalar_lea.vmem %s3335_s21, %s2114_s4 }
  0x16   : > { %v681_v13 = vld [vmem:[%s2829_s29 + $0x8] sm:$0xff]  ;;  %v683_v14 = vld [vmem:[%s2829_s29 + $0x18] sm:$0xff]  ;;  %v680_v55 = vld [vmem:[%s2829_s29] sm:$0xff]  ;;  %s3350_s28 = sld [smem:[#allocation4_spill]]  ;;  %s3352_s26 = sshll.u32 %s3354_s1, 4 }
  0x17   : > { %893 = vmatpush1.bf16.msra.mxu0 %v2507_v3  ;;  %v2522_v15 = vld [vmem:[%s3346_s3 + $0x60] ss:$8 sps:$4 sm:$0xff]   ;;  %v2523_v16 = vld [vmem:[%s3346_s3 + $0x74] ss:$8 sps:$4 sm:$0xff]   ;;  %v685_v17 = vpack.c.bf16 %v683_v14, %v681_v13  ;;  %v2550_v18 = vld [vmem:[%s3348_s0 + $0x4] ss:$8 sps:$4 sm:$0xff]   ;;  %s671_s27 = scalar_lea.vmem %s3334_s20, %s3352_s26 }
  0x18   : > { %894 = vmatprep.subr.bf16.mxu0 %v2508_v4  ;;  %v2552_v19 = vld [vmem:[%s3348_s0] ss:$8 sps:$4 sm:$0xff]   ;;  %v2553_v20 = vld [vmem:[%s3348_s0 + $0x14] ss:$8 sps:$4 sm:$0xff]   ;;  %1147 = vmatprep.subr.bf16.mxu1 %v2550_v18  ;;  %v2555_v21 = vld [vmem:[%s3348_s0 + $0x10] ss:$8 sps:$4 sm:$0xff]  }
  0x19   : > { %922 = vmatprep.mubr.bf16.mxu0 %v685_v17  ;;  %1148 = vmatpush1.bf16.msra.mxu1 %v2552_v19  ;;  %v2525_v22 = vld [vmem:[%s3346_s3 + $0x70] ss:$8 sps:$4 sm:$0xff]   ;;  %v2556_v23 = vld [vmem:[%s3348_s0 + $0x24] ss:$8 sps:$4 sm:$0xff]   ;;  %v2558_v25 = vld [vmem:[%s3348_s0 + $0x20] ss:$8 sps:$4 sm:$0xff]  }
  0x1a   : > { %1149 = vmatprep.subr.bf16.mxu1 %v2553_v20  ;;  %v2526_v24 = vld [vmem:[%s3346_s3 + $0x84] ss:$8 sps:$4 sm:$0xff]   ;;  %v2528_v26 = vld [vmem:[%s3346_s3 + $0x80] ss:$8 sps:$4 sm:$0xff]   ;;  %v2559_v27 = vld [vmem:[%s3348_s0 + $0x34] ss:$8 sps:$4 sm:$0xff]  }
  0x1b   : > { %895 = vmatpush1.bf16.msra.mxu0 %v2510_v5  ;;  %v2529_v28 = vld [vmem:[%s3346_s3 + $0x94] ss:$8 sps:$4 sm:$0xff]   ;;  %v2561_v29 = vld [vmem:[%s3348_s0 + $0x30] ss:$8 sps:$4 sm:$0xff]   ;;  %v2562_v31 = vld [vmem:[%s3348_s0 + $0x44] ss:$8 sps:$4 sm:$0xff]  }
  0x1c   : > { %896 = vmatprep.subr.bf16.mxu0 %v2511_v6  ;;  %v2531_v30 = vld [vmem:[%s3346_s3 + $0x90] ss:$8 sps:$4 sm:$0xff]   ;;  %v2532_v32 = vld [vmem:[%s3346_s3 + $0xa4] ss:$8 sps:$4 sm:$0xff]   ;;  %v2534_v33 = vld [vmem:[%s3346_s3 + $0xa0] ss:$8 sps:$4 sm:$0xff]  }
  0x1d   : > { %1150 = vmatpush1.bf16.msra.mxu1 %v2555_v21  ;;  %v2564_v34 = vld [vmem:[%s3348_s0 + $0x40] ss:$8 sps:$4 sm:$0xff]   ;;  %v2535_v35 = vld [vmem:[%s3346_s3 + $0xb4] ss:$8 sps:$4 sm:$0xff]   ;;  %v2567_v37 = vld [vmem:[%s3348_s0 + $0x50] ss:$8 sps:$4 sm:$0xff]  }
  0x1e   : > { %1151 = vmatprep.subr.bf16.mxu1 %v2556_v23  ;;  %v2565_v36 = vld [vmem:[%s3348_s0 + $0x54] ss:$8 sps:$4 sm:$0xff]   ;;  %v2537_v38 = vld [vmem:[%s3346_s3 + $0xb0] ss:$8 sps:$4 sm:$0xff]   ;;  %v2568_v39 = vld [vmem:[%s3348_s0 + $0x64] ss:$8 sps:$4 sm:$0xff]  }
  0x1f   : > { %897 = vmatpush1.bf16.msra.mxu0 %v2513_v7  ;;  %v2538_v40 = vld [vmem:[%s3346_s3 + $0xc4] ss:$8 sps:$4 sm:$0xff]   ;;  %v2570_v41 = vld [vmem:[%s3348_s0 + $0x60] ss:$8 sps:$4 sm:$0xff]   ;;  %v2571_v43 = vld [vmem:[%s3348_s0 + $0x74] ss:$8 sps:$4 sm:$0xff]  }
  0x20   : > { %898 = vmatprep.subr.bf16.mxu0 %v2514_v8  ;;  %v2540_v42 = vld [vmem:[%s3346_s3 + $0xc0] ss:$8 sps:$4 sm:$0xff]   ;;  %v2541_v44 = vld [vmem:[%s3346_s3 + $0xd4] ss:$8 sps:$4 sm:$0xff]   ;;  %v2573_v45 = vld [vmem:[%s3348_s0 + $0x70] ss:$8 sps:$4 sm:$0xff]  }
  0x21   : > { %1152 = vmatpush1.bf16.msra.mxu1 %v2558_v25  ;;  %v2543_v46 = vld [vmem:[%s3346_s3 + $0xd0] ss:$8 sps:$4 sm:$0xff]   ;;  %v2574_v47 = vld [vmem:[%s3348_s0 + $0x84] ss:$8 sps:$4 sm:$0xff]   ;;  %v2576_v49 = vld [vmem:[%s3348_s0 + $0x80] ss:$8 sps:$4 sm:$0xff]   ;;  %v720_v25 = vlaneseq }
  0x22   : > { %1153 = vmatprep.subr.bf16.mxu1 %v2559_v27  ;;  %v2544_v48 = vld [vmem:[%s3346_s3 + $0xe4] ss:$8 sps:$4 sm:$0xff]   ;;  %v2546_v50 = vld [vmem:[%s3346_s3 + $0xe0] ss:$8 sps:$4 sm:$0xff]   ;;  %v2577_v51 = vld [vmem:[%s3348_s0 + $0x94] ss:$8 sps:$4 sm:$0xff]  }
  0x23   : > { %899 = vmatpush1.bf16.msra.mxu0 %v2516_v9  ;;  %v2547_v52 = vld [vmem:[%s3346_s3 + $0xf4] ss:$8 sps:$4 sm:$0xff]   ;;  %v2579_v53 = vld [vmem:[%s3348_s0 + $0x90] ss:$8 sps:$4 sm:$0xff]   ;;  %v2580_v57 = vld [vmem:[%s3348_s0 + $0xa4] ss:$8 sps:$4 sm:$0xff]  }
  0x24   : > { %900 = vmatprep.subr.bf16.mxu0 %v2517_v10  ;;  %v2549_v54 = vld [vmem:[%s3346_s3 + $0xf0] ss:$8 sps:$4 sm:$0xff]   ;;  %v2582_v58 = vld [vmem:[%s3348_s0 + $0xa0] ss:$8 sps:$4 sm:$0xff]   ;;  %v2583_v60 = vld [vmem:[%s3348_s0 + $0xb4] ss:$8 sps:$4 sm:$0xff]  }
  0x25   : > { %1154 = vmatpush1.bf16.msra.mxu1 %v2561_v29  ;;  %v682_v56 = vld [vmem:[%s2829_s29 + $0x10] sm:$0xff]  ;;  %v2586_v62 = vld [vmem:[%s3348_s0 + $0xc4] ss:$8 sps:$4 sm:$0xff]   ;;  %v2588_v63 = vld [vmem:[%s3348_s0 + $0xc0] ss:$8 sps:$4 sm:$0xff]   ;;  %v2666_v10 = vmov 0.0  }
  0x26   : > { %1155 = vmatprep.subr.bf16.mxu1 %v2562_v31  ;;  %v684_v59 = vpack.c.bf16 %v682_v56, %v680_v55  ;;  %v2585_v61 = vld [vmem:[%s3348_s0 + $0xb0] ss:$8 sps:$4 sm:$0xff]   ;;  %v2589_v0 = vld [vmem:[%s3348_s0 + $0xd4] ss:$8 sps:$4 sm:$0xff]   ;;  %v2592_v2 = vld [vmem:[%s3348_s0 + $0xe4] ss:$8 sps:$4 sm:$0xff]  }
  0x27   : > { %901 = vmatpush1.bf16.msra.mxu0 %v2519_v11  ;;  %v2591_v1 = vld [vmem:[%s3348_s0 + $0xd0] ss:$8 sps:$4 sm:$0xff]   ;;  %v2594_v3 = vld [vmem:[%s3348_s0 + $0xe0] ss:$8 sps:$4 sm:$0xff]   ;;  %v2595_v4 = vld [vmem:[%s3348_s0 + $0xf4] ss:$8 sps:$4 sm:$0xff]  }
  0x28   : > { %902 = vmatprep.subr.bf16.mxu0 %v2520_v12  ;;  %v2597_v5 = vld [vmem:[%s3348_s0 + $0xf0] ss:$8 sps:$4 sm:$0xff]   ;;  %v1198_v6 = vld [vmem:[%s3349_s24] sm:$0xff]  ;;  %v1199_v7 = vld [vmem:[%s3349_s24 + $0x8] sm:$0xff] }
  0x29   : > { %1156 = vmatpush1.bf16.msra.mxu1 %v2564_v34  ;;  %v1200_v8 = vld [vmem:[%s3349_s24 + $0x10] sm:$0xff]  ;;  %v2422_v9 = vpack.c.bf16 %v1199_v7, %v1198_v6  ;;  %v1201_v11 = vld [vmem:[%s3349_s24 + $0x18] sm:$0xff]  ;;  %v1202_v13 = vld [vmem:[%s3349_s24 + $0x20] sm:$0xff] }
  0x2a   : > { %1157 = vmatprep.subr.bf16.mxu1 %v2565_v36  ;;  %v2426_v12 = vpack.c.bf16 %v1201_v11, %v1200_v8  ;;  %v1203_v14 = vld [vmem:[%s3349_s24 + $0x28] sm:$0xff]  ;;  %v1205_v17 = vld [vmem:[%s3349_s24 + $0x38] sm:$0xff]  ;;  %v1206_v19 = vld [vmem:[%s3349_s24 + $0x40] sm:$0xff] }
  0x2b   : > { %903 = vmatpush1.bf16.msra.mxu0 %v2522_v15  ;;  %v2430_v15 = vpack.c.bf16 %v1203_v14, %v1202_v13  ;;  %v1207_v20 = vld [vmem:[%s3349_s24 + $0x48] sm:$0xff]  ;;  %v1209_v23 = vld [vmem:[%s3349_s24 + $0x58] sm:$0xff]  ;;  %v1210_v55 = vld [vmem:[%s3349_s24 + $0x60] sm:$0xff] }
  0x2c   : > { %904 = vmatprep.subr.bf16.mxu0 %v2523_v16  ;;  %v1204_v16 = vld [vmem:[%s3349_s24 + $0x30] sm:$0xff]  ;;  %v2438_v21 = vpack.c.bf16 %v1207_v20, %v1206_v19  ;;  %v1211_v56 = vld [vmem:[%s3349_s24 + $0x68] sm:$0xff] }
  0x2d   : > { %1158 = vmatpush1.bf16.msra.mxu1 %v2567_v37  ;;  %v2434_v18 = vpack.c.bf16 %v1205_v17, %v1204_v16  ;;  %v1471_v17 = vld [vmem:[%s3324_s10 + $0x10] sm:$0xff] }
  0x2e   : > { %1159 = vmatprep.subr.bf16.mxu1 %v2568_v39 }
  0x2f   : > { %905 = vmatpush1.bf16.msra.mxu0 %v2525_v22  ;;  %v1208_v22 = vld [vmem:[%s3349_s24 + $0x50] sm:$0xff] }
  0x30   : > { %906 = vmatprep.subr.bf16.mxu0 %v2526_v24  ;;  %v2442_v24 = vpack.c.bf16 %v1209_v23, %v1208_v22 }
  0x31   : > { %1160 = vmatpush1.bf16.msra.mxu1 %v2570_v41 }
  0x32   : > { %1161 = vmatprep.subr.bf16.mxu1 %v2571_v43 }
  0x33   : > { %907 = vmatpush1.bf16.msra.mxu0 %v2528_v26  ;;  %v721_v26 = vshrl.u32 %v720_v25, 7 }
  0x34   : > { %908 = vmatprep.subr.bf16.mxu0 %v2529_v28  ;;  %v718_v28 = vld [vmem:[%s3350_s28] sm:$0x3] }
  0x35   : > { %1162 = vmatpush1.bf16.msra.mxu1 %v2573_v45  ;;  %v3032_v27 = vsub.s32 0, %v721_v26  ;;  %v3037_v29 = vsub.s32 1, %v721_v26 }
  0x36   : > { %1163 = vmatprep.subr.bf16.mxu1 %v2574_v47 }
  0x37   : > { %909 = vmatpush1.bf16.msra.mxu0 %v2531_v30  ;;  %v723_v30 = vrot.slane %v718_v28, %v3032_v27  ;;  %v727_v31 = vrot.slane %v718_v28, %v3037_v29  ;;  %v1473_v28 = vld [vmem:[%s3324_s10 + $0x20] sm:$0xff] }
  0x38   : > { %910 = vmatprep.subr.bf16.mxu0 %v2532_v32 }
  0x39   : > { %1164 = vmatpush1.bf16.msra.mxu1 %v2576_v49 }
  0x3a   : > { %1165 = vmatprep.subr.bf16.mxu1 %v2577_v51  ;;  %v2599_v51 = vld [vmem:[%s3322_s8 + $0x8] sm:$0xff]  }
  0x3b   : > { %911 = vmatpush1.bf16.msra.mxu0 %v2534_v33 }
  0x3c   : > { %912 = vmatprep.subr.bf16.mxu0 %v2535_v35 }
  0x3d   : > { %1166 = vmatpush1.bf16.msra.mxu1 %v2579_v53  ;;  %v2601_v53 = vld [vmem:[%s3322_s8 + $0x18] sm:$0xff]  }
  0x3e   : > { %1167 = vmatprep.subr.bf16.mxu1 %v2580_v57  ;;  %v2446_v57 = vpack.c.bf16 %v1211_v56, %v1210_v55 }
  0x3f   : > { %913 = vmatpush1.bf16.msra.mxu0 %v2537_v38 }
  0x40   : > { %914 = vmatprep.subr.bf16.mxu0 %v2538_v40 }
  0x41   : > { %1168 = vmatpush1.bf16.msra.mxu1 %v2582_v58  ;;  %v2603_v58 = vld [vmem:[%s3322_s8 + $0x28] sm:$0xff]  }
  0x42   : > { %1169 = vmatprep.subr.bf16.mxu1 %v2583_v60  ;;  %v1213_v60 = vld [vmem:[%s3349_s24 + $0x78] sm:$0xff] }
  0x43   : > { %915 = vmatpush1.bf16.msra.mxu0 %v2540_v42 }
  0x44   : > { %916 = vmatprep.subr.bf16.mxu0 %v2541_v44 }
  0x45   : > { %1170 = vmatpush1.bf16.msra.mxu1 %v2585_v61 }
  0x46   : > { %1171 = vmatprep.subr.bf16.mxu1 %v2586_v62  ;;  %v2604_v62 = vld [vmem:[%s3322_s8 + $0x30] sm:$0xff]  }
  0x47   : > { %917 = vmatpush1.bf16.msra.mxu0 %v2543_v46 }
  0x48   : > { %918 = vmatprep.subr.bf16.mxu0 %v2544_v48 }
  0x49   : > { %1172 = vmatpush1.bf16.msra.mxu1 %v2588_v63  ;;  %v2605_v63 = vld [vmem:[%s3322_s8 + $0x38] sm:$0xff]  }
  0x4a   : > { %1173 = vmatprep.subr.bf16.mxu1 %v2589_v0  ;;  %v1469_v0 = vld [vmem:[%s3324_s10] sm:$0xff] }
  0x4b   : > { %919 = vmatpush1.bf16.msra.mxu0 %v2546_v50  ;;  %v2598_v50 = vld [vmem:[%s3322_s8] sm:$0xff]  }
  0x4c   : > { %920 = vmatprep.subr.bf16.mxu0 %v2547_v52  ;;  %v2600_v52 = vld [vmem:[%s3322_s8 + $0x10] sm:$0xff]  }
  0x4d   : > { %1174 = vmatpush1.bf16.msra.mxu1 %v2591_v1  ;;  %v1470_v1 = vld [vmem:[%s3324_s10 + $0x8] sm:$0xff] }
  0x4e   : > { %1175 = vmatprep.subr.bf16.mxu1 %v2592_v2  ;;  %v2454_v2 = vpack.c.bf16 %v1470_v1, %v1469_v0 }
  0x4f   : > { %921 = vmatpush1.bf16.msra.mxu0 %v2549_v54  ;;  %v2602_v54 = vld [vmem:[%s3322_s8 + $0x20] sm:$0xff]  }
  0x50   : > { %2423 = vmatprep.subr.bf16.mxu0 %v2422_v9 }
  0x51   : > { %1176 = vmatpush1.bf16.msra.mxu1 %v2594_v3  ;;  %v975_v3 = vld [vmem:[%s3351_s25] sm:$0x3] }
  0x52   : > { %923 = vmatmul.mubr.bf16.vlgmr.msra.gmra.mrb[0].mxu0 %v684_v59  ;;  %1177 = vmatprep.subr.bf16.mxu1 %v2595_v4  ;;  %v1212_v59 = vld [vmem:[%s3349_s24 + $0x70] sm:$0xff]  ;;  %v980_v4 = vrot.slane %v975_v3, %v3032_v27 }
  0x53   : > { %2425 = vmatpush3.bf16.msra.mxu0 %v2422_v9  ;;  %v2450_v61 = vpack.c.bf16 %v1213_v60, %v1212_v59 }
  0x54   : > { %2427 = vmatprep.subr.bf16.mxu0 %v2426_v12 }
  0x55   : > { %1178 = vmatpush1.bf16.msra.mxu1 %v2597_v5  ;;  %v984_v5 = vrot.slane %v975_v3, %v3037_v29 }
  0x56   : > { %2327 = vmatprep.subr.bf16.mxu1 %v2666_v10 }
  0x57   : > { %2429 = vmatpush3.bf16.msra.mxu0 %v2426_v12 }
  0x58   : > { %2431 = vmatprep.subr.bf16.mxu0 %v2430_v15 }
  0x5b   : > { %2433 = vmatpush3.bf16.msra.mxu0 %v2430_v15 }
  0x5c   : > { %2435 = vmatprep.subr.bf16.mxu0 %v2434_v18 }
  0x5f   : > { %2437 = vmatpush3.bf16.msra.mxu0 %v2434_v18  ;;  %v1472_v18 = vld [vmem:[%s3324_s10 + $0x18] sm:$0xff] }
  0x60   : > { %2439 = vmatprep.subr.bf16.mxu0 %v2438_v21  ;;  %v2458_v23 = vpack.c.bf16 %v1472_v18, %v1471_v17  ;;  %v1319_v17 = vld [vmem:[%s3321_s7] sm:$0x3] }
  0x61   : > { %v1325_v18 = vrot.slane %v1319_v17, %v3032_v27 }
  0x63   : > { %2441 = vmatpush3.bf16.msra.mxu0 %v2438_v21 }
  0x64   : > { %2443 = vmatprep.subr.bf16.mxu0 %v2442_v24 }
  0x67   : > { %2445 = vmatpush3.bf16.msra.mxu0 %v2442_v24 }
  0x68   : > { %2447 = vmatprep.subr.bf16.mxu0 %v2446_v57 }
  0x6b   : > { %2449 = vmatpush3.bf16.msra.mxu0 %v2446_v57 }
  0x6c   : > { %2451 = vmatprep.subr.bf16.mxu0 %v2450_v61 }
  0x6f   : > { %2453 = vmatpush3.bf16.msra.mxu0 %v2450_v61 }
  0x70   : > { %2455 = vmatprep.subr.bf16.mxu0 %v2454_v2 }
 0x125   : > { %v924_v32 = vpop.f32.mrb[0].mxu0 }
 0x126   : > { %v925_v33 = vadd.f32 %v924_v32, %v723_v30  ;;  %v926_v34 = vpop.f32.mrb[1].mxu0 }
 0x127   : > { %v927_v35 = vadd.f32 %v926_v34, %v727_v31  ;;  %v928_v36 = vpop.f32.mrb[2].mxu0  ;;  %v1476_v34 = vld [vmem:[%s3324_s10 + $0x38] sm:$0xff] }
 0x128   : > { %v933_v37 = vmul.f32 0.01, %v925_v33  ;;  %v929_v38 = vadd.f32 %v928_v36, %v723_v30  ;;  %v930_v39 = vpop.f32.mrb[3].mxu0  ;;  %v1474_v30 = vld [vmem:[%s3324_s10 + $0x28] sm:$0xff]  ;;  %v1477_v36 = vld [vmem:[%s3324_s10 + $0x40] sm:$0xff] }
 0x129   : > { %v934_v40 = vmul.f32 0.01, %v927_v35  ;;  %v931_v41 = vadd.f32 %v930_v39, %v727_v31  ;;  %v2462_v32 = vpack.c.bf16 %v1474_v30, %v1473_v28  ;;  %v1479_v39 = vld [vmem:[%s3324_s10 + $0x50] sm:$0xff] }
 0x12a   : > { %v935_v42 = vmul.f32 0.01, %v929_v38  ;;  %v937_v44 = vmax.f32 %v925_v33, %v933_v37  ;;  %v1475_v33 = vld [vmem:[%s3324_s10 + $0x30] sm:$0xff]  ;;  %v1478_v37 = vld [vmem:[%s3324_s10 + $0x48] sm:$0xff] }
 0x12b   : > { %v936_v43 = vmul.f32 0.01, %v931_v41  ;;  %v938_v46 = vmax.f32 %v927_v35, %v934_v40  ;;  %v2466_v35 = vpack.c.bf16 %v1476_v34, %v1475_v33  ;;  %v1480_v40 = vld [vmem:[%s3324_s10 + $0x58] sm:$0xff] }
 0x12c   : > { %v939_v45 = vmax.f32 %v929_v38, %v935_v42  ;;  %v2470_v38 = vpack.c.bf16 %v1478_v37, %v1477_v36  ;;  %v1481_v42 = vld [vmem:[%s3324_s10 + $0x60] sm:$0xff]  ;;  %v2607_v37 = vld [vmem:[%s3328_s14 + $0x8] sm:$0xff]  }
 0x12d   : > { %v940_v47 = vmax.f32 %v931_v41, %v936_v43  ;;  %v2474_v41 = vpack.c.bf16 %v1480_v40, %v1479_v39  ;;  %v1482_v43 = vld [vmem:[%s3324_s10 + $0x68] sm:$0xff]  ;;  %v2606_v36 = vld [vmem:[%s3328_s14] sm:$0xff]  }
 0x12e   : > { %v941_v48 = vpack.c.bf16 %v939_v45, %v937_v44  ;;  %v2478_v44 = vpack.c.bf16 %v1482_v43, %v1481_v42  ;;  %v1483_v45 = vld [vmem:[%s3324_s10 + $0x70] sm:$0xff] }
 0x12f   : > { %v942_v49 = vpack.c.bf16 %v940_v47, %v938_v46  ;;  %v1484_v46 = vld [vmem:[%s3324_s10 + $0x78] sm:$0xff] }
 0x130   : > { %v2482_v47 = vpack.c.bf16 %v1484_v46, %v1483_v45 }
 0x131   : > { %1179 = vmatprep.mubr.bf16.mxu1 %v942_v49 }
 0x132   : > { %1180 = vmatmul.mubr.bf16.vlgmr.msra.gmra.mrb[0].mxu1 %v941_v48  ;;  %v2179_v48 = vld [vmem:[%s3320_s6] ss:$0 sm:$0xff] }
 0x133   : > { %2328 = vmatpush3.bf16.msra.mxu1 %v2598_v50  ;;  %2343 = vmatprep.mubr.msk.bf16.mxu1 %vm2667_vm0, %v2666_v10 }
 0x134   : > { %2329 = vmatprep.subr.bf16.mxu1 %v2666_v10 }
 0x137   : > { %2330 = vmatpush3.bf16.msra.mxu1 %v2599_v51  ;;  %v2180_v51 = vld [vmem:[%s3323_s9] ss:$0 sm:$0xff] }
 0x138   : > { %2331 = vmatprep.subr.bf16.mxu1 %v2666_v10 }
 0x13b   : > { %2332 = vmatpush3.bf16.msra.mxu1 %v2600_v52 }
 0x13c   : > { %2333 = vmatprep.subr.bf16.mxu1 %v2666_v10 }
 0x13f   : > { %2334 = vmatpush3.bf16.msra.mxu1 %v2601_v53 }
 0x140   : > { %2335 = vmatprep.subr.bf16.mxu1 %v2666_v10 }
 0x143   : > { %2336 = vmatpush3.bf16.msra.mxu1 %v2602_v54 }
 0x144   : > { %2337 = vmatprep.subr.bf16.mxu1 %v2666_v10 }
 0x147   : > { %2338 = vmatpush3.bf16.msra.mxu1 %v2603_v58 }
 0x148   : > { %2339 = vmatprep.subr.bf16.mxu1 %v2666_v10 }
 0x14b   : > { %2340 = vmatpush3.bf16.msra.mxu1 %v2604_v62 }
 0x14c   : > { %2341 = vmatprep.subr.bf16.mxu1 %v2666_v10 }
 0x14f   : > { %2342 = vmatpush3.bf16.msra.mxu1 %v2605_v63 }
 0x150   : > { %2382 = vmatprep.subr.bf16.mxu1 %v2666_v10 }
 0x205   : > { %v1181_v6 = vpop.f32.mrb[0].mxu1 }
 0x206   : > { %v1182_v7 = vadd.f32 %v1181_v6, %v980_v4  ;;  %v1183_v8 = vpop.f32.mrb[1].mxu1 }
 0x207   : > { %v1184_v9 = vadd.f32 %v1183_v8, %v984_v5  ;;  %v1185_v11 = vpop.f32.mrb[2].mxu1 }
 0x208   : > { %v1190_v12 = vmul.f32 0.01, %v1182_v7  ;;  %v1186_v13 = vadd.f32 %v1185_v11, %v980_v4  ;;  %v1187_v14 = vpop.f32.mrb[3].mxu1 }
 0x209   : > { %v1191_v15 = vmul.f32 0.01, %v1184_v9  ;;  %v1188_v16 = vadd.f32 %v1187_v14, %v984_v5 }
 0x20a   : > { %v1194_v19 = vmax.f32 %v1182_v7, %v1190_v12  ;;  %v1192_v20 = vmul.f32 0.01, %v1186_v13 }
 0x20b   : > { %v1193_v21 = vmul.f32 0.01, %v1188_v16  ;;  %v1195_v24 = vmax.f32 %v1184_v9, %v1191_v15 }
 0x20c   : > { %v1196_v22 = vmax.f32 %v1186_v13, %v1192_v20  ;;  %2324 = vmatprep.mubr.f32.mxu0 %v1194_v19 }
 0x20d   : > { %v1197_v26 = vmax.f32 %v1188_v16, %v1193_v21  ;;  %v1340_v21 = vrot.slane %v1319_v17, %v3037_v29 }
 0x20e   : > { %2325 = vmatmul.mubr.f32.vlgmr.msra.gmra.mrb[4].mxu0 %v1196_v22 }
 0x20f   : > { %v1352_v31 = vpack.c.bf16 %v1197_v26, %v1195_v24  ;;  %2457 = vmatpush3.bf16.msra.mxu0 %v2454_v2 }
 0x210   : > { %2459 = vmatprep.subr.bf16.mxu0 %v2458_v23 }
 0x211   : > { %2344 = vmatmul.mubr.bf16.vlgmr.msra.gmra.mrb[4].mxu1 %v1352_v31 }
 0x212   : > { %2398 = vmatprep.mubr.msk.bf16.mxu1 %vm2667_vm0, %v2666_v10  ;;  %2383 = vmatpush3.bf16.msra.mxu1 %v2606_v36  ;;  %v2636_v36 = vld [vmem:[%s3332_s18 + $0x44] ss:$8 sps:$4 sm:$0xff]  }
 0x213   : > { %2461 = vmatpush3.bf16.msra.mxu0 %v2458_v23  ;;  %2384 = vmatprep.subr.bf16.mxu1 %v2666_v10 }
 0x214   : > { %2463 = vmatprep.subr.bf16.mxu0 %v2462_v32 }
 0x216   : > { %2385 = vmatpush3.bf16.msra.mxu1 %v2607_v37  ;;  %v2634_v37 = vld [vmem:[%s3332_s18 + $0x40] ss:$8 sps:$4 sm:$0xff]  }
 0x217   : > { %2465 = vmatpush3.bf16.msra.mxu0 %v2462_v32  ;;  %2386 = vmatprep.subr.bf16.mxu1 %v2666_v10 }
 0x218   : > { %2467 = vmatprep.subr.bf16.mxu0 %v2466_v35 }
 0x21b   : > { %2469 = vmatpush3.bf16.msra.mxu0 %v2466_v35  ;;  %v2668_v35 = vmov 0  }
 0x21c   : > { %2471 = vmatprep.subr.bf16.mxu0 %v2470_v38  ;;  %2498 = vset.pattern.permute.xlu0 %v2668_v35 }
 0x21d   : > { %2499 = vset.pattern.permute.xlu1 %v2668_v35 }
 0x21f   : > { %2473 = vmatpush3.bf16.msra.mxu0 %v2470_v38  ;;  %v2189_v38 = vld [vmem:[%s3325_s11] ss:$0 sm:$0xff] }
 0x220   : > { %2475 = vmatprep.subr.bf16.mxu0 %v2474_v41 }
 0x223   : > { %2477 = vmatpush3.bf16.msra.mxu0 %v2474_v41  ;;  %v1321_v41 = vand.u32 127, %v720_v25  ;;  %v2608_v25 = vld [vmem:[%s3328_s14 + $0x10] sm:$0xff]  }
 0x224   : > { %2479 = vmatprep.subr.bf16.mxu0 %v2478_v44  ;;  %2387 = vmatpush3.bf16.msra.mxu1 %v2608_v25 }
 0x225   : > { %vm1334_vm2 = vcmp.eq.s32.totalorder %v1321_v41, 0  ;;  %vm1349_vm3 = vcmp.eq.s32.totalorder %v1321_v41, 1  ;;  %2388 = vmatprep.subr.bf16.mxu1 %v2666_v10 }
 0x227   : > { %2481 = vmatpush3.bf16.msra.mxu0 %v2478_v44 }
 0x228   : > { %2483 = vmatprep.subr.bf16.mxu0 %v2482_v47 }
 0x22b   : > { %2485 = vmatpush3.bf16.msra.mxu0 %v2482_v47 }
 0x22c   : > { %2402 = vmatprep.subr.bf16.mxu0 %v2666_v10 }
 0x2e1   : > { %v2326_v49 = vpop.f32.mrb[4].mxu0 }
 0x2e2   : > { %v1287_v50 = vpop.f32.mrb[5].mxu0  ;;  %v1293_v54 = vadd.f32 %v2326_v49, %v2179_v48 }
 0x2e3   : > { %v1288_v52 = vadd.f32 %v2179_v48, %v1287_v50 }
 0x2e4   : > { %v1458_v53 = vpop.f32.mrb[4].mxu1  ;;  %v1300_v0 = vsel %vm1296_vm1, %v1293_v54, -inf }
 0x2e5   : > { %v1459_v55 = vadd.f32 %v2180_v51, %v1458_v53  ;;  %v2345_v56 = vpop.f32.mrb[5].mxu1  ;;  %v1297_v57 = vsel %vm1296_vm1, %v1288_v52, -inf }
 0x2e6   : > { %v1461_v58 = vpop.f32.mrb[6].mxu1  ;;  %1298 = vmax.xlane.f32.xlu0 %v1297_v57  ;;  %v2610_v56 = vld [vmem:[%s3328_s14 + $0x20] sm:$0xff]   ;;  %v2611_v57 = vld [vmem:[%s3328_s14 + $0x28] sm:$0xff]  }
 0x2e7   : > { %v1465_v59 = vmul.f32 0.01, %v1459_v55  ;;  %v1462_v60 = vadd.f32 %v2180_v51, %v1461_v58  ;;  %v2346_v61 = vpop.f32.mrb[7].mxu1  ;;  %v2612_v58 = vld [vmem:[%s3328_s14 + $0x30] sm:$0xff]  }
 0x2e8   : > { %v2615_v61 = vld [vmem:[%s3330_s16 + $0x8] sm:$0xff]  }
 0x2e9   : > { %v1467_v62 = vmax.f32 %v1459_v55, %v1465_v59  ;;  %v1466_v63 = vmul.f32 0.01, %v1462_v60  ;;  %v2669_v55 = vmov 1   ;;  %v2613_v59 = vld [vmem:[%s3328_s14 + $0x38] sm:$0xff]  }
 0x2ea   : > { %1301 = vmax.xlane.f32.xlu0 %v1300_v0  ;;  %v2618_v0 = vld [vmem:[%s3330_s16 + $0x20] sm:$0xff]  }
 0x2eb   : > { %v1468_v1 = vmax.f32 %v1462_v60, %v1466_v63  ;;  %2379 = vmatprep.mubr.f32.mxu0 %v1467_v62  ;;  %v2614_v60 = vld [vmem:[%s3330_s16] sm:$0xff]   ;;  %v2616_v62 = vld [vmem:[%s3330_s16 + $0x10] sm:$0xff]   ;;  %v2617_v63 = vld [vmem:[%s3330_s16 + $0x18] sm:$0xff]  }
 0x2ed   : > { %2380 = vmatmul.mubr.f32.vlgmr.msra.gmra.mrb[6].mxu0 %v1468_v1  ;;  %v1574_v1 = vld [vmem:[%s3326_s12] sm:$0x3] }
 0x2ee   : > { %2418 = vmatprep.mubr.msk.bf16.mxu0 %vm2667_vm0, %v2666_v10  ;;  %2403 = vmatpush3.bf16.msra.mxu0 %v2614_v60 }
 0x2ef   : > { %2404 = vmatprep.subr.bf16.mxu0 %v2666_v10 }
 0x2f2   : > { %2405 = vmatpush3.bf16.msra.mxu0 %v2615_v61 }
 0x2f3   : > { %2406 = vmatprep.subr.bf16.mxu0 %v2666_v10 }
 0x2f6   : > { %2407 = vmatpush3.bf16.msra.mxu0 %v2616_v62 }
 0x2f7   : > { %2408 = vmatprep.subr.bf16.mxu0 %v2666_v10 }
 0x2fa   : > { %2409 = vmatpush3.bf16.msra.mxu0 %v2617_v63 }
 0x2fb   : > { %2410 = vmatprep.subr.bf16.mxu0 %v2666_v10 }
 0x2fe   : > { %2411 = vmatpush3.bf16.msra.mxu0 %v2618_v0 }
 0x2ff   : > { %2412 = vmatprep.subr.bf16.mxu0 %v2666_v10 }
 0x373   : > { %v1299_v2 = vpop.xlane.xlu0 %1298 }
 0x374   : > { %v1303_v3 = vsub.f32 %v1288_v52, %v1299_v2  ;;  %v1589_v2 = vrot.slane %v1574_v1, %v3032_v27 }
 0x376   : > { %v1305_v4 = vmul.f32 1.442695, %v1303_v3 }
 0x377   : > { %v1302_v5 = vpop.xlane.xlu0 %1301 }
 0x378   : > { %2646 = vpow2.f32 %v1305_v4  ;;  %v1304_v6 = vsub.f32 %v1293_v54, %v1302_v5  ;;  %v2609_v54 = vld [vmem:[%s3328_s14 + $0x18] sm:$0xff]  }
 0x379   : > { %2389 = vmatpush3.bf16.msra.mxu1 %v2609_v54  ;;  %v2643_v54 = vld [vmem:[%s3332_s18 + $0x70] ss:$8 sps:$4 sm:$0xff]  }
 0x37a   : > { %v1307_v7 = vmul.f32 1.442695, %v1304_v6  ;;  %2390 = vmatprep.subr.bf16.mxu1 %v2666_v10  ;;  %v1611_v6 = vrot.slane %v1574_v1, %v3037_v29 }
 0x37c   : > { %2648 = vpow2.f32 %v1307_v7  ;;  %v2190_v7 = vld [vmem:[%s3327_s13] ss:$0 sm:$0xff] }
 0x37d   : > { %2391 = vmatpush3.bf16.msra.mxu1 %v2610_v56 }
 0x37e   : > { %2392 = vmatprep.subr.bf16.mxu1 %v2666_v10 }
 0x381   : > { %2393 = vmatpush3.bf16.msra.mxu1 %v2611_v57 }
 0x382   : > { %v2647_v8 = vpop.eup %2646  ;;  %2394 = vmatprep.subr.bf16.mxu1 %v2666_v10 }
 0x383   : > { %v1309_v9 = vsel %vm1296_vm1, %v2647_v8, 0.0 }
 0x384   : > { %1310 = vadd.xlane.f32.xlu1 %v1309_v9 }
 0x385   : > { %2395 = vmatpush3.bf16.msra.mxu1 %v2612_v58 }
 0x386   : > { %v2649_v11 = vpop.eup %2648  ;;  %2396 = vmatprep.subr.bf16.mxu1 %v2666_v10 }
 0x387   : > { %v1312_v12 = vsel %vm1296_vm1, %v2649_v11, 0.0 }
 0x388   : > { %1313 = vadd.xlane.f32.xlu1 %v1312_v12 }
 0x389   : > { %2397 = vmatpush3.bf16.msra.mxu1 %v2613_v59 }
 0x3c0   : > { %v2381_v13 = vpop.f32.mrb[6].mxu0 }
 0x3c1   : > { %v1558_v14 = vpop.f32.mrb[7].mxu0  ;;  %v1564_v40 = vadd.f32 %v2381_v13, %v2189_v38 }
 0x3c2   : > { %v1559_v39 = vadd.f32 %v2189_v38, %v1558_v14  ;;  %v2639_v38 = vld [vmem:[%s3332_s18 + $0x54] ss:$8 sps:$4 sm:$0xff]  }
 0x411   : > { %v1311_v15 = vpop.xlane.xlu1 %1310 }
 0x412   : > { %2650 = vrcp.f32 %v1311_v15 }
 0x415   : > { %v1314_v16 = vpop.xlane.xlu1 %1313 }
 0x416   : > { %2652 = vrcp.f32 %v1314_v16 }
 0x417   : > { %2654 = vtanh.f32 %v1559_v39  ;;  %v2637_v39 = vld [vmem:[%s3332_s18 + $0x50] ss:$8 sps:$4 sm:$0xff]  }
 0x418   : > { %2656 = vtanh.f32 %v1564_v40  ;;  %v2191_v40 = vld [vmem:[%s3329_s15] ss:$0 sm:$0xff] }
 0x41c   : > { %v2651_v19 = vpop.eup %2650 }
 0x41d   : > { %v1316_v20 = vmul.f32 %v2651_v19, %v2647_v8 }
 0x41f   : > { %v1326_v22 = vmul.f32 %v1325_v18, %v1316_v20  ;;  %v1341_v26 = vmul.f32 %v1340_v21, %v1316_v20 }
 0x420   : > { %v2653_v23 = vpop.eup %2652 }
 0x421   : > { %v1328_v24 = vsel %vm1296_vm1, %v1326_v22, 0.0  ;;  %v1318_v28 = vmul.f32 %v2653_v23, %v2649_v11  ;;  %v1343_v31 = vsel %vm1296_vm1, %v1341_v26, 0.0  ;;  %v2655_v46 = vpop.eup %2654  ;;  %v2619_v23 = vld [vmem:[%s3330_s16 + $0x28] sm:$0xff]   ;;  %v2621_v26 = vld [vmem:[%s3330_s16 + $0x38] sm:$0xff]  }
 0x422   : > { %1329 = vadd.xlane.f32.xlu0 %v1328_v24  ;;  %v2657_v51 = vpop.eup %2656  ;;  %2413 = vmatpush3.bf16.msra.mxu0 %v2619_v23  ;;  %v2620_v24 = vld [vmem:[%s3330_s16 + $0x30] sm:$0xff]  }
 0x423   : > { %v1327_v30 = vmul.f32 %v1325_v18, %v1318_v28  ;;  %v1342_v33 = vmul.f32 %v1340_v21, %v1318_v28  ;;  %2414 = vmatprep.subr.bf16.mxu0 %v2666_v10  ;;  %v2622_v28 = vld [vmem:[%s3332_s18] ss:$8 sps:$4 sm:$0xff]  }
 0x425   : > { %v1331_v32 = vsel %vm1296_vm1, %v1327_v30, 0.0  ;;  %v1346_v34 = vsel %vm1296_vm1, %v1342_v33, 0.0  ;;  %v2624_v30 = vld [vmem:[%s3332_s18 + $0x4] ss:$8 sps:$4 sm:$0xff]   ;;  %v2628_v33 = vld [vmem:[%s3332_s18 + $0x20] ss:$8 sps:$4 sm:$0xff]  }
 0x426   : > { %1344 = vadd.xlane.f32.xlu0 %v1343_v31  ;;  %1332 = vadd.xlane.f32.xlu1 %v1331_v32  ;;  %v2627_v31 = vld [vmem:[%s3332_s18 + $0x14] ss:$8 sps:$4 sm:$0xff]   ;;  %v2630_v32 = vld [vmem:[%s3332_s18 + $0x24] ss:$8 sps:$4 sm:$0xff]  }
 0x427   : > { %2415 = vmatpush3.bf16.msra.mxu0 %v2620_v24  ;;  %1963 = vmatprep.subr.bf16.mxu1 %v2624_v30 }
 0x428   : > { %2416 = vmatprep.subr.bf16.mxu0 %v2666_v10  ;;  %v2625_v10 = vld [vmem:[%s3332_s18 + $0x10] ss:$8 sps:$4 sm:$0xff]  }
 0x42a   : > { %1347 = vadd.xlane.f32.xlu1 %v1346_v34  ;;  %v2633_v34 = vld [vmem:[%s3332_s18 + $0x34] ss:$8 sps:$4 sm:$0xff]  }
 0x42b   : > { %2417 = vmatpush3.bf16.msra.mxu0 %v2621_v26 }
 0x4af   : > { %v1330_v42 = vpop.xlane.xlu0 %1329 }
 0x4b0   : > { %v1335_v43 = vsel %vm1334_vm2, %v1330_v42, 0.0 }
 0x4b3   : > { %v1333_v44 = vpop.xlane.xlu1 %1332  ;;  %v1345_v45 = vpop.xlane.xlu0 %1344 }
 0x4b4   : > { %v1350_v47 = vsel %vm1349_vm3, %v1345_v45, %v1335_v43  ;;  %v1336_v49 = vsel %vm1334_vm2, %v1333_v44, 0.0 }
 0x4b5   : > { %v1569_v48 = vadd.f32 %v2655_v46, %v1350_v47 }
 0x4b7   : > { %1572 = vst.msk [vmem:[%s677_s23] sm:$0xff] %vm1571_vm4, %v1569_v48  ;;  %v1348_v50 = vpop.xlane.xlu1 %1347  ;;  %1578 = vperm.xlu0 %2498, %v1569_v48  }
 0x4b8   : > { %v1351_v52 = vsel %vm1349_vm3, %v1348_v50, %v1336_v49 }
 0x4b9   : > { %v1570_v53 = vadd.f32 %v2657_v51, %v1351_v52  ;;  %v2642_v51 = vld [vmem:[%s3332_s18 + $0x64] ss:$8 sps:$4 sm:$0xff]   ;;  %v2640_v52 = vld [vmem:[%s3332_s18 + $0x60] ss:$8 sps:$4 sm:$0xff]  }
 0x4bb   : > { %1573 = vst.msk [vmem:[%s677_s23 + $0x8] sm:$0xff] %vm1571_vm4, %v1570_v53  ;;  %1583 = vperm.xlu1 %2499, %v1570_v53   ;;  %2501 = vset.pattern.permute.xlu0 %v2669_v55 }
 0x4bf   : > { %2500 = vset.pattern.permute.xlu1 %v2669_v55  ;;  %v2200_v55 = vld [vmem:[%s3331_s17] ss:$0 sm:$0xff] }
 0x4c0   : > { %1601 = vperm.xlu1 %2500, %v1569_v48  }
 0x4c4   : > { %1605 = vperm.xlu1 %2500, %v1570_v53   ;;  %v2645_v53 = vld [vmem:[%s3332_s18 + $0x74] ss:$8 sps:$4 sm:$0xff]  }
 0x536   : > { %v1579_v3 = vpop.permute.xlu0 %1578 }
 0x537   : > { %v1590_v5 = vmul.f32 %v1589_v2, %v1579_v3  ;;  %v1871_v3 = vld [vmem:[%s3333_s19] sm:$0x3] }
 0x539   : > { %v1598_v9 = vadd.f32 %v2190_v7, %v1590_v5  ;;  %v1880_v5 = vrot.slane %v1871_v3, %v3037_v29 }
 0x53a   : > { %v1584_v4 = vpop.permute.xlu1 %1583 }
 0x53b   : > { %v1591_v11 = vmul.f32 %v1589_v2, %v1584_v4  ;;  %v1876_v4 = vrot.slane %v1871_v3, %v3032_v27 }
 0x53d   : > { %v1599_v15 = vadd.f32 %v2190_v7, %v1591_v11 }
 0x53f   : > { %v1602_v8 = vpop.permute.xlu1 %1601 }
 0x540   : > { %v1612_v12 = vmul.f32 %v1611_v6, %v1602_v8 }
 0x542   : > { %v1614_v13 = vadd.f32 %v1612_v12, %v1598_v9 }
 0x543   : > { %v1606_v14 = vpop.permute.xlu1 %1605 }
 0x544   : > { %v1613_v16 = vmul.f32 %v1611_v6, %v1606_v14  ;;  %v1616_v17 = vmul.f32 0.01, %v1614_v13 }
 0x546   : > { %v1615_v18 = vadd.f32 %v1613_v16, %v1599_v15  ;;  %v1618_v20 = vmax.f32 %v1614_v13, %v1616_v17 }
 0x548   : > { %v1617_v19 = vmul.f32 0.01, %v1615_v18 }
 0x54a   : > { %v1619_v21 = vmax.f32 %v1615_v18, %v1617_v19 }
 0x54c   : > { %v1620_v22 = vpack.c.bf16 %v1619_v21, %v1618_v20 }
 0x54e   : > { %2399 = vmatmul.mubr.bf16.vlgmr.msra.gmra.mrb[8].mxu1 %v1620_v22 }
 0x54f   : > { %1995 = vmatprep.mubr.bf16.mxu1 %v2668_v35  ;;  %1964 = vmatpush1.bf16.msra.mxu1 %v2622_v28  ;;  %v2631_v35 = vld [vmem:[%s3332_s18 + $0x30] ss:$8 sps:$4 sm:$0xff]  }
 0x550   : > { %1965 = vmatprep.subr.bf16.mxu1 %v2627_v31 }
 0x553   : > { %1966 = vmatpush1.bf16.msra.mxu1 %v2625_v10 }
 0x554   : > { %1967 = vmatprep.subr.bf16.mxu1 %v2630_v32 }
 0x557   : > { %1968 = vmatpush1.bf16.msra.mxu1 %v2628_v33 }
 0x558   : > { %1969 = vmatprep.subr.bf16.mxu1 %v2633_v34 }
 0x55b   : > { %1970 = vmatpush1.bf16.msra.mxu1 %v2631_v35 }
 0x55c   : > { %1971 = vmatprep.subr.bf16.mxu1 %v2636_v36 }
 0x55f   : > { %1972 = vmatpush1.bf16.msra.mxu1 %v2634_v37 }
 0x560   : > { %1973 = vmatprep.subr.bf16.mxu1 %v2639_v38 }
 0x563   : > { %1974 = vmatpush1.bf16.msra.mxu1 %v2637_v39 }
 0x564   : > { %1975 = vmatprep.subr.bf16.mxu1 %v2642_v51 }
 0x567   : > { %1976 = vmatpush1.bf16.msra.mxu1 %v2640_v52 }
 0x568   : > { %1977 = vmatprep.subr.bf16.mxu1 %v2645_v53 }
 0x56b   : > { %1978 = vmatpush1.bf16.msra.mxu1 %v2643_v54 }
 0x621   : > { %v1726_v41 = vpop.f32.mrb[8].mxu1 }
 0x622   : > { %v1727_v42 = vadd.f32 %v2191_v40, %v1726_v41  ;;  %v2400_v43 = vpop.f32.mrb[9].mxu1 }
 0x623   : > { %v1729_v44 = vpop.f32.mrb[10].mxu1 }
 0x624   : > { %v1733_v45 = vmul.f32 0.01, %v1727_v42  ;;  %v1730_v46 = vadd.f32 %v2191_v40, %v1729_v44  ;;  %v2401_v47 = vpop.f32.mrb[11].mxu1 }
 0x626   : > { %v1734_v48 = vmul.f32 0.01, %v1730_v46  ;;  %v1735_v25 = vmax.f32 %v1727_v42, %v1733_v45 }
 0x628   : > { %v1736_v49 = vmax.f32 %v1730_v46, %v1734_v48 }
 0x62a   : > { %v1737_v50 = vpack.c.bf16 %v1736_v49, %v1735_v25 }
 0x62c   : > { %2419 = vmatmul.mubr.bf16.vlgmr.msra.gmra.mrb[8].mxu0 %v1737_v50 }
 0x6ff   : > { %v1843_v56 = vpop.f32.mrb[8].mxu0 }
 0x700   : > { %v1844_v57 = vadd.f32 %v2200_v55, %v1843_v56  ;;  %v2420_v58 = vpop.f32.mrb[9].mxu0 }
 0x701   : > { %v1846_v59 = vpop.f32.mrb[10].mxu0 }
 0x702   : > { %v1850_v60 = vmul.f32 0.01, %v1844_v57  ;;  %v1847_v61 = vadd.f32 %v2200_v55, %v1846_v59  ;;  %v2421_v62 = vpop.f32.mrb[11].mxu0 }
 0x704   : > { %v1851_v63 = vmul.f32 0.01, %v1847_v61  ;;  %v1852_v0 = vmax.f32 %v1844_v57, %v1850_v60 }
 0x706   : > { %v1853_v1 = vmax.f32 %v1847_v61, %v1851_v63 }
 0x708   : > { %v1854_v2 = vpack.c.bf16 %v1853_v1, %v1852_v0 }
 0x70a   : > { %1996 = vmatmul.mubr.bf16.vlgmr.msra.gmra.mrb[12].mxu1 %v1854_v2 }
 0x7dd   : > { %v1997_v6 = vpop.f32.mrb[12].mxu1 }
 0x7de   : > { %v1998_v7 = vadd.f32 %v1997_v6, %v1876_v4  ;;  %v1999_v8 = vpop.f32.mrb[13].mxu1 }
 0x7df   : > { %v2000_v9 = vadd.f32 %v1999_v8, %v1880_v5  ;;  %v2001_v11 = vpop.f32.mrb[14].mxu1 }
 0x7e0   : > { %2006 = vst [vmem:[%s671_s27] sm:$0xff] %v1998_v7  ;;  %v2002_v12 = vadd.f32 %v2001_v11, %v1876_v4  ;;  %v2003_v13 = vpop.f32.mrb[15].mxu1 }
 0x7e1   : > { %2007 = vst [vmem:[%s671_s27 + $0x8] sm:$0xff] %v2000_v9  ;;  %v2004_v14 = vadd.f32 %v2003_v13, %v1880_v5 }
 0x7e2   : > { %2008 = vst [vmem:[%s671_s27 + $0x10] sm:$0xff] %v2002_v12 }
 0x7e3   : > { %2009 = vst [vmem:[%s671_s27 + $0x18] sm:$0xff] %v2004_v14 }
 0x7e4 PF: > { %s32_s2 = sadd.s32 1, %s2664_s2  }
 0x7e5   : > { %p29_p4 = scmp.ge.s32.totalorder %s32_s2, 5  }
 0x7e7   :  { %31 = sbr.rel (!%p29_p4) target bundleno = 7 (0x7), region = 142 }

</bundles_post_ra>
